<compile_context>
chip_gen: v7x
topology: tpu7x:2x2x1
jax: 0.10.0
libtpu: 0.0.40
codegen_flags: <defaults>
</compile_context>

<pallas_src>
import math

import jax
import jax.numpy as jnp
import numpy as np
from jax.experimental import pallas as pl
from jax.experimental.pallas import tpu as pltpu


# ----------------------------------------------------------------------------
# Synthetic DAG (stands in for the `dag` argument of Net.__init__).
# 2 input nodes, 2 hidden nodes, 2 output nodes, one pooling gate; exercises
# 1x1 convs, 3x3 convs, a renewing ("additional") conv, stage pooling,
# BN+PReLU node activations and the global-avg-pool + softmax head.
# ----------------------------------------------------------------------------
class DAG:
    def __init__(self):
        self.all_nodes = [0.0, 1.0, 2.0, 3.0, 4.0, 5.0]
        self.input_nodes = [0.0, 1.0]
        self.output_nodes = [4.0, 5.0]
        self.pooling_gate = [2.5]
        self.nodes_area = [0, 0, 0, 0, 0, 0]
        self.nodes_connections = {
            '0.0': [], '1.0': [],
            '2.0': [0.0, 1.0],
            '3.0': [0.0, 2.0],
            '4.0': [2.0, 3.0],
            '5.0': [1.0, 3.0],
        }
        self.renewing_connections = {
            '0.0': [], '1.0': [], '2.0': [],
            '3.0': [1.0],
            '4.0': [], '5.0': [],
        }


# ----------------------------------------------------------------------------
# Channel arithmetic (mirrors Net.__init__)
# ----------------------------------------------------------------------------
def node_channel(dag, node, scale, ext_ratio):
    c = scale
    for g in dag.pooling_gate:
        if node > g:
            c = math.ceil(c * ext_ratio)
    if node in dag.output_nodes or node in dag.input_nodes:
        c = 1
    return c


def conn_channel(dag, connect, scale, ext_ratio):
    c = scale
    if connect in dag.input_nodes or connect in dag.output_nodes:
        c = 1
    for g in dag.pooling_gate:
        if connect > g:
            c = math.ceil(c * ext_ratio)
    return c


def build_plan(dag, scale, ext_ratio):
    plan = {}
    for str_node, conns in dag.nodes_connections.items():
        node = float(str_node)
        plan[str_node] = dict(
            cout=node_channel(dag, node, scale, ext_ratio),
            ksz=3 if int(node) % 2 == 0 else 1,
            cin=sum(conn_channel(dag, c, scale, ext_ratio) for c in conns),
            cin_add=sum(conn_channel(dag, c, scale, ext_ratio)
                        for c in dag.renewing_connections[str_node]),
        )
    return plan


# ----------------------------------------------------------------------------
# Parameters.
#   * BN gamma/beta + PReLU alpha stacked into one (C_total, 3) VMEM array;
#     each node owns a contiguous row block -> (C, 1) broadcast columns.
#   * Each conv's weights repacked so the per-(tap, ci) cout-column is a
#     contiguous VMEM slice:
#       cout > 1 : shape (cout, K*K*cin), column index  = tap*cin + ci
#       cout == 1: shape (K*K*cin, 1),   row-block     = [tap*cin : tap*cin+cin]
#     with tap = ky*K + kx (PyTorch (Cout, Cin, KH, KW) cross-correlation).
# ----------------------------------------------------------------------------
def init_params(dag, plan, key):
    act_rows, act_slices, row = [], {}, 0
    for node in dag.all_nodes:
        sn = str(node)
        c = plan[sn]['cout']
        key, k1, k2 = jax.random.split(key, 3)
        gamma = 1.0 + 0.1 * jax.random.normal(k1, (c,), jnp.float32)
        beta = 0.1 * jax.random.normal(k2, (c,), jnp.float32)
        alpha = jnp.full((c,), 0.25, jnp.float32)       # PReLU default init
        act_rows.append(jnp.stack([gamma, beta, alpha], axis=1))   # (c, 3)
        act_slices[sn] = (row, c)
        row += c
    act_params = jnp.concatenate(act_rows, axis=0)      # (C_total, 3)

    conv_packed = []                     # kernel VMEM operands, fixed order
    conv_idx = {'conv': {}, 'conv_add': {}}
    conv_raw = {}                        # PyTorch-layout weights for the ref
    for node in dag.all_nodes:
        if node in dag.input_nodes:
            continue
        sn = str(node)
        p = plan[sn]
        for which, conns in (('conv', dag.nodes_connections[sn]),
                             ('conv_add', dag.renewing_connections[sn])):
            if not conns:
                continue
            cin = p['cin'] if which == 'conv' else p['cin_add']
            cout, k = p['cout'], p['ksz']
            key, kw = jax.random.split(key)
            w = 0.1 * jax.random.normal(kw, (cout, cin, k, k), jnp.float32)
            conv_raw[(which, sn)] = w
            # [ky, kx, ci, co] -> rows = tap*cin + ci, cols = co
            w_t = jnp.transpose(w, (2, 3, 1, 0)).reshape(k * k * cin, cout)
            packed = w_t if cout == 1 else w_t.T
            conv_idx[which][sn] = len(conv_packed)
            conv_packed.append(packed.astype(jnp.float32))
    return act_params, act_slices, conv_packed, conv_idx, conv_raw


# ----------------------------------------------------------------------------
# Constant matrices / masks built once in the wrapper (trace-time numpy):
#   * 2x2 average pooling as a dense-K matmul on the flattened B*H*W lanes
#   * global average pooling per batch segment
#   * halo-validity 0/1 masks for the 9 taps of a 3x3 conv, per stage
# TODO(synk): for large B*H*W (esp. v7x's 64 MiB VMEM) factor the dense
# pool/GAP matrices per batch instead of the O((B*H*W)^2) block-diagonal form.
# ----------------------------------------------------------------------------
def make_pool_matrix(B, H, W):
    H2, W2 = H // 2, W // 2
    P = np.zeros((B * H * W, B * H2 * W2), np.float32)
    for b in range(B):
        for y in range(H):
            for x in range(W):
                g = b * H * W + y * W + x
                m = b * H2 * W2 + (y // 2) * W2 + (x // 2)
                P[g, m] = 0.25
    return jnp.asarray(P)


def make_gap_matrix(B, H, W):
    HW = H * W
    G = np.zeros((B * HW, B), np.float32)
    for b in range(B):
        G[b * HW:(b + 1) * HW, b] = 1.0 / HW
    return jnp.asarray(G)


def make_halo_masks(B, H, W, ksz=3):
    L = B * H * W
    pad = (ksz - 1) // 2
    lane = np.arange(L)
    sp = lane % (H * W)
    yy, xx = sp // W, sp % W
    rows = []
    for ky in range(ksz):
        for kx in range(ksz):
            dy, dx = ky - pad, kx - pad
            valid = ((yy + dy >= 0) & (yy + dy <= H - 1) &
                     (xx + dx >= 0) & (xx + dx <= W - 1))
            rows.append(valid.astype(np.float32))
    return jnp.asarray(np.stack(rows, axis=0))           # (ksz*ksz, L)


# ----------------------------------------------------------------------------
# In-kernel building blocks (operate on stacked (C, B*H*W) arrays)
# ----------------------------------------------------------------------------
def _bn_prelu(act_ref, start, c, x, eps=1e-5):
    """Training-mode BatchNorm2d (batch statistics, biased var) + PReLU on a
    stacked (C, L) array. Single pass: sum and sum-of-squares together."""
    inv_n = 1.0 / x.shape[1]
    s1 = jnp.sum(x, axis=1, keepdims=True) * inv_n                 # mean
    s2 = jnp.sum(x * x, axis=1, keepdims=True) * inv_n             # E[x^2]
    var = s2 - s1 * s1
    gamma = act_ref[start:start + c, 0:1]
    beta = act_ref[start:start + c, 1:2]
    alpha = act_ref[start:start + c, 2:3]
    y = (x - s1) * (jax.lax.rsqrt(var + eps) * gamma) + beta
    return jnp.where(y > 0.0, y, alpha * y)


def _conv(w_ref, stack, cout, ksz, W, masks_ref):
    """KxK conv (stride 1, zero padding (K-1)//2, bias-free, PyTorch
    cross-correlation semantics) as VPU broadcast FMAs.

    stack    : (cin, L) stacked source channels, batch folded into lanes.
    w_ref    : packed weights (see init_params).
    masks_ref: (K*K, L) 0/1 halo-validity masks for this resolution stage.
    Each tap is ONE lane roll of the whole stack; weights enter as (cout, 1)
    broadcast columns (or a (cin, 1) block + sublane reduce when cout == 1).
    """
    cin, L = stack.shape
    pad = (ksz - 1) // 2
    wmat = w_ref[...]
    acc = jnp.zeros((cout, L), jnp.float32)
    for ky in range(ksz):
        for kx in range(ksz):
            t = ky * ksz + kx
            off = (ky - pad) * W + (kx - pad)
            if off == 0:
                shifted = stack
            else:
                # shifted[g] = stack[g + off]; out-of-bounds halo positions
                # (and any cross-batch wrap) are zeroed by the mask row.
                shifted = (pltpu.roll(stack, shift=(-off) % L, axis=1)
                           * masks_ref[t:t + 1, :])
            base = t * cin
            if cout == 1:
                wcol = wmat[base:base + cin, :]                    # (cin, 1)
                acc = acc + jnp.sum(wcol * shifted, axis=0, keepdims=True)
            else:
                for ci in range(cin):
                    wc = wmat[:, base + ci:base + ci + 1]          # (cout, 1)
                    acc = acc + wc * shifted[ci:ci + 1, :]
    return acc


# ----------------------------------------------------------------------------
# The single fused kernel for the whole DAG forward pass
# ----------------------------------------------------------------------------
def make_kernel(dag, plan, act_slices, conv_idx, B, H0, W0, n_convs):
    n_gates = len(dag.pooling_gate)
    n_stages = n_gates + 1

    def kernel(x_ref, act_ref, *refs):
        conv_refs = refs[:n_convs]
        pool_refs = refs[n_convs:n_convs + n_gates]
        mask_refs = refs[n_convs + n_gates:n_convs + n_gates + n_stages]
        gap_ref = refs[n_convs + n_gates + n_stages]
        o_ref = refs[n_convs + n_gates + n_stages + 1]

        H, W = H0, W0
        node_a = {}   # str(node) -> (C, B*H*W) acted feature maps, lane-dense

        def act(sn, x):
            start, c = act_slices[sn]
            return _bn_prelu(act_ref, start, c, x)

        # ---- input nodes: one raw channel each -> BN + PReLU ---------------
        color = 0
        for inode in dag.input_nodes:
            sn = str(float(inode))
            node_a[sn] = act(sn, x_ref[color:color + 1, :])
            color += 1

        # ---- hidden / output nodes ------------------------------------------
        current_stage = 0
        for node in dag.all_nodes:
            if node in dag.input_nodes:
                continue
            sn = str(node)
            if (current_stage < n_gates
                    and node > dag.pooling_gate[current_stage]):
                # 2x2 average pooling of ALL stored acted maps: one batched
                # MXU matmul against the constant pooling matrix.
                keys = list(node_a.keys())
                stacked = jnp.concatenate([node_a[k] for k in keys], axis=0)
                pooled = jnp.dot(stacked, pool_refs[current_stage][...],
                                 preferred_element_type=jnp.float32)
                r = 0
                for k in keys:
                    c = node_a[k].shape[0]
                    node_a[k] = pooled[r:r + c, :]
                    r += c
                current_stage += 1
                H, W = H // 2, W // 2

            cout, ksz = plan[sn]['cout'], plan[sn]['ksz']
            conns = dag.nodes_connections[sn]
            conns_add = dag.renewing_connections[sn]
            # TODO(synk): zero-tensor fallback for fully unconnected nodes is
            # not exercised by this DAG and is not implemented.
            out = None
            if conns:
                stack = jnp.concatenate([node_a[str(c)] for c in conns], axis=0)
                assert stack.shape[0] == plan[sn]['cin']
                out = _conv(conv_refs[conv_idx['conv'][sn]], stack, cout, ksz,
                            W, mask_refs[current_stage])
            if conns_add:
                stack = jnp.concatenate([node_a[str(c)] for c in conns_add],
                                        axis=0)
                assert stack.shape[0] == plan[sn]['cin_add']
                oa = _conv(conv_refs[conv_idx['conv_add'][sn]], stack, cout,
                           ksz, W, mask_refs[current_stage])
                out = oa if out is None else out + oa
            node_a[sn] = act(sn, out)

        # ---- head: global average pool (one matmul) + softmax over classes --
        feats = jnp.concatenate(
            [node_a[str(float(o))] for o in dag.output_nodes], axis=0)
        logits = jnp.dot(feats, gap_ref[...],
                         preferred_element_type=jnp.float32)     # (n_cls, B)
        m = jnp.max(logits, axis=0, keepdims=True)
        e = jnp.exp(logits - m)
        o_ref[...] = e / jnp.sum(e, axis=0, keepdims=True)       # single store

    return kernel


# ----------------------------------------------------------------------------
# Wrapper: layout plumbing + the single pallas_call
# ----------------------------------------------------------------------------
def forward(dag, plan, act_slices, conv_idx, act_params, conv_packed, x_nchw):
    B, Cin, H0, W0 = x_nchw.shape
    assert Cin == len(dag.input_nodes)
    # TODO(synk): per-input-node nodes_area pre-pooling (all zeros in this DAG)
    # would be applied here on the raw input channels before flattening.
    assert all(a == 0 for a in dag.nodes_area)

    L0 = B * H0 * W0
    # Lane-dense layout: (input-channel, batch*H*W); B*H*W multiple of 128.
    x_flat = jnp.transpose(x_nchw, (1, 0, 2, 3)).reshape(
        Cin, L0).astype(jnp.float32)

    n_gates = len(dag.pooling_gate)
    pool_mats, halo_masks = [], []
    h, w = H0, W0
    for s in range(n_gates + 1):
        halo_masks.append(make_halo_masks(B, h, w, 3))
        if s < n_gates:
            pool_mats.append(make_pool_matrix(B, h, w))
            h, w = h // 2, w // 2
    gap_mat = make_gap_matrix(B, h, w)

    n_cls = sum(plan[str(float(o))]['cout'] for o in dag.output_nodes)
    kernel = make_kernel(dag, plan, act_slices, conv_idx, B, H0, W0,
                         n_convs=len(conv_packed))

    n_in = 2 + len(conv_packed) + n_gates + (n_gates + 1) + 1
    out = pl.pallas_call(
        kernel,
        out_shape=jax.ShapeDtypeStruct((n_cls, B), jnp.float32),
        in_specs=[pl.BlockSpec(memory_space=pltpu.MemorySpace.VMEM)] * n_in,
        out_specs=pl.BlockSpec(memory_space=pltpu.MemorySpace.VMEM),
        compiler_params=pltpu.CompilerParams(
            vmem_limit_bytes=32 * 1024 * 1024),
    )(x_flat, act_params, *conv_packed, *pool_mats, *halo_masks, gap_mat)
    # TODO(synk): a "parallel" batch grid axis would use both v7x TensorCores,
    # but BN batch statistics couple the whole batch (needs cross-core reduce).
    return out.T                       # (B, n_cls); tiny transpose in wrapper


# ----------------------------------------------------------------------------
# Pure-JAX (XLA) reference of the same forward pass (NCHW), for verification
# ----------------------------------------------------------------------------
def ref_forward(dag, plan, act_slices, act_params, conv_raw, x):
    eps = 1e-5

    def bn_prelu(t, sn):
        start, c = act_slices[sn]
        g = act_params[start:start + c, 0].reshape(1, c, 1, 1)
        b = act_params[start:start + c, 1].reshape(1, c, 1, 1)
        a = act_params[start:start + c, 2].reshape(1, c, 1, 1)
        mean = jnp.mean(t, axis=(0, 2, 3), keepdims=True)
        var = jnp.mean((t - mean) ** 2, axis=(0, 2, 3), keepdims=True)
        y = (t - mean) * jax.lax.rsqrt(var + eps) * g + b
        return jnp.where(y > 0.0, y, a * y)

    def conv(t, sn, which):
        w = conv_raw[(which, sn)]
        k = w.shape[-1]
        return jax.lax.conv_general_dilated(
            t, w, (1, 1), ((k // 2, k // 2), (k // 2, k // 2)),
            dimension_numbers=('NCHW', 'OIHW', 'NCHW'),
            precision=jax.lax.Precision.HIGHEST)

    def pool(t):
        b, c, h, w = t.shape
        return t.reshape(b, c, h // 2, 2, w // 2, 2).mean(axis=(3, 5))

    node_a = {}
    color = 0
    for inode in dag.input_nodes:
        sn = str(float(inode))
        node_a[sn] = bn_prelu(x[:, color:color + 1], sn)
        color += 1
    current_stage = 0
    for node in dag.all_nodes:
        if node in dag.input_nodes:
            continue
        sn = str(node)
        if (current_stage < len(dag.pooling_gate)
                and node > dag.pooling_gate[current_stage]):
            current_stage += 1
            for kk in list(node_a.keys()):
                node_a[kk] = pool(node_a[kk])
        conns = dag.nodes_connections[sn]
        conns_add = dag.renewing_connections[sn]
        out = None
        if conns:
            cc = jnp.concatenate([node_a[str(c)] for c in conns], axis=1)
            out = conv(cc, sn, 'conv')
        if conns_add:
            cc = jnp.concatenate([node_a[str(c)] for c in conns_add], axis=1)
            oa = conv(cc, sn, 'conv_add')
            out = oa if out is None else out + oa
        node_a[sn] = bn_prelu(out, sn)
    cat = jnp.concatenate(
        [node_a[str(float(o))] for o in dag.output_nodes], axis=1)
    feats = jnp.mean(cat, axis=(2, 3))
    return jax.nn.softmax(feats, axis=1)


# ----------------------------------------------------------------------------
# Main
# ----------------------------------------------------------------------------
if __name__ == "__main__":
    key = jax.random.PRNGKey(0)
    dag = DAG()
    scale, ext_ratio = 4, 1

    plan = build_plan(dag, scale, ext_ratio)
    kparam, kx = jax.random.split(key)
    (act_params, act_slices, conv_packed,
     conv_idx, conv_raw) = init_params(dag, plan, kparam)

    # PyTorch-style NCHW input: batch=2, one color channel per input node, 16x16
    x = jax.random.normal(kx, (2, len(dag.input_nodes), 16, 16),
                          dtype=jnp.float32)

    fwd = jax.jit(lambda inp, ap, cw: forward(dag, plan, act_slices, conv_idx,
                                              ap, cw, inp))
    out = jax.block_until_ready(fwd(x, act_params, conv_packed))

    assert out.shape == (2, len(dag.output_nodes))
    row_sums = jnp.sum(out, axis=1)
    assert bool(jnp.all(jnp.abs(row_sums - 1.0) < 1e-4))

    # Check against the pure-JAX reference (tolerance covers MXU f32 matmul /
    # transcendental precision differences; logic errors would be >> this).
    ref = ref_forward(dag, plan, act_slices, act_params, conv_raw, x)
    err = float(jnp.max(jnp.abs(out - ref)))
    assert err < 2e-2, f"kernel/reference mismatch: max abs err = {err}"

    print("KERNEL_OK")
</pallas_src>

<mosaic_0001>
module attributes {stable_mosaic.version = 11 : i64} {
  func.func @kernel(%arg0: memref<2x512xf32, #tpu.memory_space<vmem>>, %arg1: memref<12x3xf32, #tpu.memory_space<vmem>>, %arg2: memref<4x18xf32, #tpu.memory_space<vmem>>, %arg3: memref<4x5xf32, #tpu.memory_space<vmem>>, %arg4: memref<4x1xf32, #tpu.memory_space<vmem>>, %arg5: memref<72x1xf32, #tpu.memory_space<vmem>>, %arg6: memref<5x1xf32, #tpu.memory_space<vmem>>, %arg7: memref<512x128xf32, #tpu.memory_space<vmem>>, %arg8: memref<9x512xf32, #tpu.memory_space<vmem>>, %arg9: memref<9x128xf32, #tpu.memory_space<vmem>>, %arg10: memref<128x2xf32, #tpu.memory_space<vmem>>, %arg11: memref<2x2xf32, #tpu.memory_space<vmem>>) attributes {dimension_semantics = [], scalar_prefetch = 0 : i64, scratch_operands = 0 : i64, tpu.core_type = #tpu.core_type<tc>} {
    %c0 = arith.constant 0 : index
    %c0_0 = arith.constant 0 : index
    %0 = vector.load %arg0[%c0, %c0_0] : memref<2x512xf32, #tpu.memory_space<vmem>>, vector<1x512xf32>
    %cst = arith.constant dense<0.000000e+00> : vector<1xf32>
    %1 = vector.multi_reduction <add>, %0, %cst [1] : vector<1x512xf32> to vector<1xf32>
    %2 = vector.shape_cast %1 : vector<1xf32> to vector<1x1xf32>
    %cst_1 = arith.constant 0.001953125 : f32
    %3 = vector.broadcast %cst_1 : f32 to vector<1x1xf32>
    %4 = arith.mulf %2, %3 : vector<1x1xf32>
    %5 = arith.mulf %0, %0 : vector<1x512xf32>
    %cst_2 = arith.constant dense<0.000000e+00> : vector<1xf32>
    %6 = vector.multi_reduction <add>, %5, %cst_2 [1] : vector<1x512xf32> to vector<1xf32>
    %7 = vector.shape_cast %6 : vector<1xf32> to vector<1x1xf32>
    %cst_3 = arith.constant 0.001953125 : f32
    %8 = vector.broadcast %cst_3 : f32 to vector<1x1xf32>
    %9 = arith.mulf %7, %8 : vector<1x1xf32>
    %10 = arith.mulf %4, %4 : vector<1x1xf32>
    %11 = arith.subf %9, %10 : vector<1x1xf32>
    %c0_4 = arith.constant 0 : index
    %c0_5 = arith.constant 0 : index
    %12 = vector.load %arg1[%c0_4, %c0_5] : memref<12x3xf32, #tpu.memory_space<vmem>>, vector<1x1xf32>
    %c0_6 = arith.constant 0 : index
    %c1 = arith.constant 1 : index
    %13 = vector.load %arg1[%c0_6, %c1] : memref<12x3xf32, #tpu.memory_space<vmem>>, vector<1x1xf32>
    %c0_7 = arith.constant 0 : index
    %c2 = arith.constant 2 : index
    %14 = vector.load %arg1[%c0_7, %c2] : memref<12x3xf32, #tpu.memory_space<vmem>>, vector<1x1xf32>
    %15 = vector.broadcast %4 : vector<1x1xf32> to vector<1x512xf32>
    %16 = arith.subf %0, %15 : vector<1x512xf32>
    %cst_8 = arith.constant 9.99999974E-6 : f32
    %17 = vector.broadcast %cst_8 : f32 to vector<1x1xf32>
    %18 = arith.addf %11, %17 : vector<1x1xf32>
    %19 = math.rsqrt %18 : vector<1x1xf32>
    %20 = arith.mulf %19, %12 : vector<1x1xf32>
    %21 = vector.broadcast %20 : vector<1x1xf32> to vector<1x512xf32>
    %22 = arith.mulf %16, %21 : vector<1x512xf32>
    %23 = vector.broadcast %13 : vector<1x1xf32> to vector<1x512xf32>
    %24 = arith.addf %22, %23 : vector<1x512xf32>
    %cst_9 = arith.constant 0.000000e+00 : f32
    %25 = vector.broadcast %cst_9 : f32 to vector<1x512xf32>
    %26 = arith.cmpf ogt, %24, %25 : vector<1x512xf32>
    %27 = vector.broadcast %14 : vector<1x1xf32> to vector<1x512xf32>
    %28 = arith.mulf %27, %24 : vector<1x512xf32>
    %29 = arith.select %26, %24, %28 : vector<1x512xi1>, vector<1x512xf32>
    %c1_10 = arith.constant 1 : index
    %c0_11 = arith.constant 0 : index
    %30 = vector.load %arg0[%c1_10, %c0_11] : memref<2x512xf32, #tpu.memory_space<vmem>>, vector<1x512xf32>
    %cst_12 = arith.constant dense<0.000000e+00> : vector<1xf32>
    %31 = vector.multi_reduction <add>, %30, %cst_12 [1] : vector<1x512xf32> to vector<1xf32>
    %32 = vector.shape_cast %31 : vector<1xf32> to vector<1x1xf32>
    %cst_13 = arith.constant 0.001953125 : f32
    %33 = vector.broadcast %cst_13 : f32 to vector<1x1xf32>
    %34 = arith.mulf %32, %33 : vector<1x1xf32>
    %35 = arith.mulf %30, %30 : vector<1x512xf32>
    %cst_14 = arith.constant dense<0.000000e+00> : vector<1xf32>
    %36 = vector.multi_reduction <add>, %35, %cst_14 [1] : vector<1x512xf32> to vector<1xf32>
    %37 = vector.shape_cast %36 : vector<1xf32> to vector<1x1xf32>
    %cst_15 = arith.constant 0.001953125 : f32
    %38 = vector.broadcast %cst_15 : f32 to vector<1x1xf32>
    %39 = arith.mulf %37, %38 : vector<1x1xf32>
    %40 = arith.mulf %34, %34 : vector<1x1xf32>
    %41 = arith.subf %39, %40 : vector<1x1xf32>
    %c1_16 = arith.constant 1 : index
    %c0_17 = arith.constant 0 : index
    %42 = vector.load %arg1[%c1_16, %c0_17] : memref<12x3xf32, #tpu.memory_space<vmem>>, vector<1x1xf32>
    %c1_18 = arith.constant 1 : index
    %c1_19 = arith.constant 1 : index
    %43 = vector.load %arg1[%c1_18, %c1_19] : memref<12x3xf32, #tpu.memory_space<vmem>>, vector<1x1xf32>
    %c1_20 = arith.constant 1 : index
    %c2_21 = arith.constant 2 : index
    %44 = vector.load %arg1[%c1_20, %c2_21] : memref<12x3xf32, #tpu.memory_space<vmem>>, vector<1x1xf32>
    %45 = vector.broadcast %34 : vector<1x1xf32> to vector<1x512xf32>
    %46 = arith.subf %30, %45 : vector<1x512xf32>
    %cst_22 = arith.constant 9.99999974E-6 : f32
    %47 = vector.broadcast %cst_22 : f32 to vector<1x1xf32>
    %48 = arith.addf %41, %47 : vector<1x1xf32>
    %49 = math.rsqrt %48 : vector<1x1xf32>
    %50 = arith.mulf %49, %42 : vector<1x1xf32>
    %51 = vector.broadcast %50 : vector<1x1xf32> to vector<1x512xf32>
    %52 = arith.mulf %46, %51 : vector<1x512xf32>
    %53 = vector.broadcast %43 : vector<1x1xf32> to vector<1x512xf32>
    %54 = arith.addf %52, %53 : vector<1x512xf32>
    %cst_23 = arith.constant 0.000000e+00 : f32
    %55 = vector.broadcast %cst_23 : f32 to vector<1x512xf32>
    %56 = arith.cmpf ogt, %54, %55 : vector<1x512xf32>
    %57 = vector.broadcast %44 : vector<1x1xf32> to vector<1x512xf32>
    %58 = arith.mulf %57, %54 : vector<1x512xf32>
    %59 = arith.select %56, %54, %58 : vector<1x512xi1>, vector<1x512xf32>
    %60 = tpu.concatenate %29, %59 in 0 : vector<1x512xf32>, vector<1x512xf32> -> vector<2x512xf32>
    %c0_24 = arith.constant 0 : index
    %c0_25 = arith.constant 0 : index
    %61 = vector.load %arg2[%c0_24, %c0_25] : memref<4x18xf32, #tpu.memory_space<vmem>>, vector<4x18xf32>
    %cst_26 = arith.constant 0.000000e+00 : f32
    %62 = vector.broadcast %cst_26 : f32 to vector<4x512xf32>
    %c17_i32 = arith.constant 17 : i32
    %63 = tpu.dynamic_rotate %60 by %c17_i32 dim 1 : vector<2x512xf32>, i32 -> vector<2x512xf32>
    %c0_27 = arith.constant 0 : index
    %c0_28 = arith.constant 0 : index
    %64 = vector.load %arg8[%c0_27, %c0_28] : memref<9x512xf32, #tpu.memory_space<vmem>>, vector<1x512xf32>
    %65 = vector.broadcast %64 : vector<1x512xf32> to vector<2x512xf32>
    %66 = arith.mulf %63, %65 : vector<2x512xf32>
    %67 = vector.extract_strided_slice %61 {offsets = [0, 0], sizes = [4, 1], strides = [1, 1]} : vector<4x18xf32> to vector<4x1xf32>
    %68 = vector.extract_strided_slice %66 {offsets = [0, 0], sizes = [1, 512], strides = [1, 1]} : vector<2x512xf32> to vector<1x512xf32>
    %69 = vector.broadcast %67 : vector<4x1xf32> to vector<4x512xf32>
    %70 = vector.broadcast %68 : vector<1x512xf32> to vector<4x512xf32>
    %71 = arith.mulf %69, %70 : vector<4x512xf32>
    %72 = arith.addf %62, %71 : vector<4x512xf32>
    %73 = vector.extract_strided_slice %61 {offsets = [0, 1], sizes = [4, 1], strides = [1, 1]} : vector<4x18xf32> to vector<4x1xf32>
    %74 = vector.extract_strided_slice %66 {offsets = [1, 0], sizes = [1, 512], strides = [1, 1]} : vector<2x512xf32> to vector<1x512xf32>
    %75 = vector.broadcast %73 : vector<4x1xf32> to vector<4x512xf32>
    %76 = vector.broadcast %74 : vector<1x512xf32> to vector<4x512xf32>
    %77 = arith.mulf %75, %76 : vector<4x512xf32>
    %78 = arith.addf %72, %77 : vector<4x512xf32>
    %c16_i32 = arith.constant 16 : i32
    %79 = tpu.dynamic_rotate %60 by %c16_i32 dim 1 : vector<2x512xf32>, i32 -> vector<2x512xf32>
    %c1_29 = arith.constant 1 : index
    %c0_30 = arith.constant 0 : index
    %80 = vector.load %arg8[%c1_29, %c0_30] : memref<9x512xf32, #tpu.memory_space<vmem>>, vector<1x512xf32>
    %81 = vector.broadcast %80 : vector<1x512xf32> to vector<2x512xf32>
    %82 = arith.mulf %79, %81 : vector<2x512xf32>
    %83 = vector.extract_strided_slice %61 {offsets = [0, 2], sizes = [4, 1], strides = [1, 1]} : vector<4x18xf32> to vector<4x1xf32>
    %84 = vector.extract_strided_slice %82 {offsets = [0, 0], sizes = [1, 512], strides = [1, 1]} : vector<2x512xf32> to vector<1x512xf32>
    %85 = vector.broadcast %83 : vector<4x1xf32> to vector<4x512xf32>
    %86 = vector.broadcast %84 : vector<1x512xf32> to vector<4x512xf32>
    %87 = arith.mulf %85, %86 : vector<4x512xf32>
    %88 = arith.addf %78, %87 : vector<4x512xf32>
    %89 = vector.extract_strided_slice %61 {offsets = [0, 3], sizes = [4, 1], strides = [1, 1]} : vector<4x18xf32> to vector<4x1xf32>
    %90 = vector.extract_strided_slice %82 {offsets = [1, 0], sizes = [1, 512], strides = [1, 1]} : vector<2x512xf32> to vector<1x512xf32>
    %91 = vector.broadcast %89 : vector<4x1xf32> to vector<4x512xf32>
    %92 = vector.broadcast %90 : vector<1x512xf32> to vector<4x512xf32>
    %93 = arith.mulf %91, %92 : vector<4x512xf32>
    %94 = arith.addf %88, %93 : vector<4x512xf32>
    %c15_i32 = arith.constant 15 : i32
    %95 = tpu.dynamic_rotate %60 by %c15_i32 dim 1 : vector<2x512xf32>, i32 -> vector<2x512xf32>
    %c2_31 = arith.constant 2 : index
    %c0_32 = arith.constant 0 : index
    %96 = vector.load %arg8[%c2_31, %c0_32] : memref<9x512xf32, #tpu.memory_space<vmem>>, vector<1x512xf32>
    %97 = vector.broadcast %96 : vector<1x512xf32> to vector<2x512xf32>
    %98 = arith.mulf %95, %97 : vector<2x512xf32>
    %99 = vector.extract_strided_slice %61 {offsets = [0, 4], sizes = [4, 1], strides = [1, 1]} : vector<4x18xf32> to vector<4x1xf32>
    %100 = vector.extract_strided_slice %98 {offsets = [0, 0], sizes = [1, 512], strides = [1, 1]} : vector<2x512xf32> to vector<1x512xf32>
    %101 = vector.broadcast %99 : vector<4x1xf32> to vector<4x512xf32>
    %102 = vector.broadcast %100 : vector<1x512xf32> to vector<4x512xf32>
    %103 = arith.mulf %101, %102 : vector<4x512xf32>
    %104 = arith.addf %94, %103 : vector<4x512xf32>
    %105 = vector.extract_strided_slice %61 {offsets = [0, 5], sizes = [4, 1], strides = [1, 1]} : vector<4x18xf32> to vector<4x1xf32>
    %106 = vector.extract_strided_slice %98 {offsets = [1, 0], sizes = [1, 512], strides = [1, 1]} : vector<2x512xf32> to vector<1x512xf32>
    %107 = vector.broadcast %105 : vector<4x1xf32> to vector<4x512xf32>
    %108 = vector.broadcast %106 : vector<1x512xf32> to vector<4x512xf32>
    %109 = arith.mulf %107, %108 : vector<4x512xf32>
    %110 = arith.addf %104, %109 : vector<4x512xf32>
    %c1_i32 = arith.constant 1 : i32
    %111 = tpu.dynamic_rotate %60 by %c1_i32 dim 1 : vector<2x512xf32>, i32 -> vector<2x512xf32>
    %c3 = arith.constant 3 : index
    %c0_33 = arith.constant 0 : index
    %112 = vector.load %arg8[%c3, %c0_33] : memref<9x512xf32, #tpu.memory_space<vmem>>, vector<1x512xf32>
    %113 = vector.broadcast %112 : vector<1x512xf32> to vector<2x512xf32>
    %114 = arith.mulf %111, %113 : vector<2x512xf32>
    %115 = vector.extract_strided_slice %61 {offsets = [0, 6], sizes = [4, 1], strides = [1, 1]} : vector<4x18xf32> to vector<4x1xf32>
    %116 = vector.extract_strided_slice %114 {offsets = [0, 0], sizes = [1, 512], strides = [1, 1]} : vector<2x512xf32> to vector<1x512xf32>
    %117 = vector.broadcast %115 : vector<4x1xf32> to vector<4x512xf32>
    %118 = vector.broadcast %116 : vector<1x512xf32> to vector<4x512xf32>
    %119 = arith.mulf %117, %118 : vector<4x512xf32>
    %120 = arith.addf %110, %119 : vector<4x512xf32>
    %121 = vector.extract_strided_slice %61 {offsets = [0, 7], sizes = [4, 1], strides = [1, 1]} : vector<4x18xf32> to vector<4x1xf32>
    %122 = vector.extract_strided_slice %114 {offsets = [1, 0], sizes = [1, 512], strides = [1, 1]} : vector<2x512xf32> to vector<1x512xf32>
    %123 = vector.broadcast %121 : vector<4x1xf32> to vector<4x512xf32>
    %124 = vector.broadcast %122 : vector<1x512xf32> to vector<4x512xf32>
    %125 = arith.mulf %123, %124 : vector<4x512xf32>
    %126 = arith.addf %120, %125 : vector<4x512xf32>
    %127 = vector.extract_strided_slice %61 {offsets = [0, 8], sizes = [4, 1], strides = [1, 1]} : vector<4x18xf32> to vector<4x1xf32>
    %128 = vector.extract_strided_slice %60 {offsets = [0, 0], sizes = [1, 512], strides = [1, 1]} : vector<2x512xf32> to vector<1x512xf32>
    %129 = vector.broadcast %127 : vector<4x1xf32> to vector<4x512xf32>
    %130 = vector.broadcast %128 : vector<1x512xf32> to vector<4x512xf32>
    %131 = arith.mulf %129, %130 : vector<4x512xf32>
    %132 = arith.addf %126, %131 : vector<4x512xf32>
    %133 = vector.extract_strided_slice %61 {offsets = [0, 9], sizes = [4, 1], strides = [1, 1]} : vector<4x18xf32> to vector<4x1xf32>
    %134 = vector.extract_strided_slice %60 {offsets = [1, 0], sizes = [1, 512], strides = [1, 1]} : vector<2x512xf32> to vector<1x512xf32>
    %135 = vector.broadcast %133 : vector<4x1xf32> to vector<4x512xf32>
    %136 = vector.broadcast %134 : vector<1x512xf32> to vector<4x512xf32>
    %137 = arith.mulf %135, %136 : vector<4x512xf32>
    %138 = arith.addf %132, %137 : vector<4x512xf32>
    %c511_i32 = arith.constant 511 : i32
    %139 = tpu.dynamic_rotate %60 by %c511_i32 dim 1 : vector<2x512xf32>, i32 -> vector<2x512xf32>
    %c5 = arith.constant 5 : index
    %c0_34 = arith.constant 0 : index
    %140 = vector.load %arg8[%c5, %c0_34] : memref<9x512xf32, #tpu.memory_space<vmem>>, vector<1x512xf32>
    %141 = vector.broadcast %140 : vector<1x512xf32> to vector<2x512xf32>
    %142 = arith.mulf %139, %141 : vector<2x512xf32>
    %143 = vector.extract_strided_slice %61 {offsets = [0, 10], sizes = [4, 1], strides = [1, 1]} : vector<4x18xf32> to vector<4x1xf32>
    %144 = vector.extract_strided_slice %142 {offsets = [0, 0], sizes = [1, 512], strides = [1, 1]} : vector<2x512xf32> to vector<1x512xf32>
    %145 = vector.broadcast %143 : vector<4x1xf32> to vector<4x512xf32>
    %146 = vector.broadcast %144 : vector<1x512xf32> to vector<4x512xf32>
    %147 = arith.mulf %145, %146 : vector<4x512xf32>
    %148 = arith.addf %138, %147 : vector<4x512xf32>
    %149 = vector.extract_strided_slice %61 {offsets = [0, 11], sizes = [4, 1], strides = [1, 1]} : vector<4x18xf32> to vector<4x1xf32>
    %150 = vector.extract_strided_slice %142 {offsets = [1, 0], sizes = [1, 512], strides = [1, 1]} : vector<2x512xf32> to vector<1x512xf32>
    %151 = vector.broadcast %149 : vector<4x1xf32> to vector<4x512xf32>
    %152 = vector.broadcast %150 : vector<1x512xf32> to vector<4x512xf32>
    %153 = arith.mulf %151, %152 : vector<4x512xf32>
    %154 = arith.addf %148, %153 : vector<4x512xf32>
    %c497_i32 = arith.constant 497 : i32
    %155 = tpu.dynamic_rotate %60 by %c497_i32 dim 1 : vector<2x512xf32>, i32 -> vector<2x512xf32>
    %c6 = arith.constant 6 : index
    %c0_35 = arith.constant 0 : index
    %156 = vector.load %arg8[%c6, %c0_35] : memref<9x512xf32, #tpu.memory_space<vmem>>, vector<1x512xf32>
    %157 = vector.broadcast %156 : vector<1x512xf32> to vector<2x512xf32>
    %158 = arith.mulf %155, %157 : vector<2x512xf32>
    %159 = vector.extract_strided_slice %61 {offsets = [0, 12], sizes = [4, 1], strides = [1, 1]} : vector<4x18xf32> to vector<4x1xf32>
    %160 = vector.extract_strided_slice %158 {offsets = [0, 0], sizes = [1, 512], strides = [1, 1]} : vector<2x512xf32> to vector<1x512xf32>
    %161 = vector.broadcast %159 : vector<4x1xf32> to vector<4x512xf32>
    %162 = vector.broadcast %160 : vector<1x512xf32> to vector<4x512xf32>
    %163 = arith.mulf %161, %162 : vector<4x512xf32>
    %164 = arith.addf %154, %163 : vector<4x512xf32>
    %165 = vector.extract_strided_slice %61 {offsets = [0, 13], sizes = [4, 1], strides = [1, 1]} : vector<4x18xf32> to vector<4x1xf32>
    %166 = vector.extract_strided_slice %158 {offsets = [1, 0], sizes = [1, 512], strides = [1, 1]} : vector<2x512xf32> to vector<1x512xf32>
    %167 = vector.broadcast %165 : vector<4x1xf32> to vector<4x512xf32>
    %168 = vector.broadcast %166 : vector<1x512xf32> to vector<4x512xf32>
    %169 = arith.mulf %167, %168 : vector<4x512xf32>
    %170 = arith.addf %164, %169 : vector<4x512xf32>
    %c496_i32 = arith.constant 496 : i32
    %171 = tpu.dynamic_rotate %60 by %c496_i32 dim 1 : vector<2x512xf32>, i32 -> vector<2x512xf32>
    %c7 = arith.constant 7 : index
    %c0_36 = arith.constant 0 : index
    %172 = vector.load %arg8[%c7, %c0_36] : memref<9x512xf32, #tpu.memory_space<vmem>>, vector<1x512xf32>
    %173 = vector.broadcast %172 : vector<1x512xf32> to vector<2x512xf32>
    %174 = arith.mulf %171, %173 : vector<2x512xf32>
    %175 = vector.extract_strided_slice %61 {offsets = [0, 14], sizes = [4, 1], strides = [1, 1]} : vector<4x18xf32> to vector<4x1xf32>
    %176 = vector.extract_strided_slice %174 {offsets = [0, 0], sizes = [1, 512], strides = [1, 1]} : vector<2x512xf32> to vector<1x512xf32>
    %177 = vector.broadcast %175 : vector<4x1xf32> to vector<4x512xf32>
    %178 = vector.broadcast %176 : vector<1x512xf32> to vector<4x512xf32>
    %179 = arith.mulf %177, %178 : vector<4x512xf32>
    %180 = arith.addf %170, %179 : vector<4x512xf32>
    %181 = vector.extract_strided_slice %61 {offsets = [0, 15], sizes = [4, 1], strides = [1, 1]} : vector<4x18xf32> to vector<4x1xf32>
    %182 = vector.extract_strided_slice %174 {offsets = [1, 0], sizes = [1, 512], strides = [1, 1]} : vector<2x512xf32> to vector<1x512xf32>
    %183 = vector.broadcast %181 : vector<4x1xf32> to vector<4x512xf32>
    %184 = vector.broadcast %182 : vector<1x512xf32> to vector<4x512xf32>
    %185 = arith.mulf %183, %184 : vector<4x512xf32>
    %186 = arith.addf %180, %185 : vector<4x512xf32>
    %c495_i32 = arith.constant 495 : i32
    %187 = tpu.dynamic_rotate %60 by %c495_i32 dim 1 : vector<2x512xf32>, i32 -> vector<2x512xf32>
    %c8 = arith.constant 8 : index
    %c0_37 = arith.constant 0 : index
    %188 = vector.load %arg8[%c8, %c0_37] : memref<9x512xf32, #tpu.memory_space<vmem>>, vector<1x512xf32>
    %189 = vector.broadcast %188 : vector<1x512xf32> to vector<2x512xf32>
    %190 = arith.mulf %187, %189 : vector<2x512xf32>
    %191 = vector.extract_strided_slice %61 {offsets = [0, 16], sizes = [4, 1], strides = [1, 1]} : vector<4x18xf32> to vector<4x1xf32>
    %192 = vector.extract_strided_slice %190 {offsets = [0, 0], sizes = [1, 512], strides = [1, 1]} : vector<2x512xf32> to vector<1x512xf32>
    %193 = vector.broadcast %191 : vector<4x1xf32> to vector<4x512xf32>
    %194 = vector.broadcast %192 : vector<1x512xf32> to vector<4x512xf32>
    %195 = arith.mulf %193, %194 : vector<4x512xf32>
    %196 = arith.addf %186, %195 : vector<4x512xf32>
    %197 = vector.extract_strided_slice %61 {offsets = [0, 17], sizes = [4, 1], strides = [1, 1]} : vector<4x18xf32> to vector<4x1xf32>
    %198 = vector.extract_strided_slice %190 {offsets = [1, 0], sizes = [1, 512], strides = [1, 1]} : vector<2x512xf32> to vector<1x512xf32>
    %199 = vector.broadcast %197 : vector<4x1xf32> to vector<4x512xf32>
    %200 = vector.broadcast %198 : vector<1x512xf32> to vector<4x512xf32>
    %201 = arith.mulf %199, %200 : vector<4x512xf32>
    %202 = arith.addf %196, %201 : vector<4x512xf32>
    %cst_38 = arith.constant dense<0.000000e+00> : vector<4xf32>
    %203 = vector.multi_reduction <add>, %202, %cst_38 [1] : vector<4x512xf32> to vector<4xf32>
    %204 = vector.shape_cast %203 : vector<4xf32> to vector<4x1xf32>
    %cst_39 = arith.constant 0.001953125 : f32
    %205 = vector.broadcast %cst_39 : f32 to vector<4x1xf32>
    %206 = arith.mulf %204, %205 : vector<4x1xf32>
    %207 = arith.mulf %202, %202 : vector<4x512xf32>
    %cst_40 = arith.constant dense<0.000000e+00> : vector<4xf32>
    %208 = vector.multi_reduction <add>, %207, %cst_40 [1] : vector<4x512xf32> to vector<4xf32>
    %209 = vector.shape_cast %208 : vector<4xf32> to vector<4x1xf32>
    %cst_41 = arith.constant 0.001953125 : f32
    %210 = vector.broadcast %cst_41 : f32 to vector<4x1xf32>
    %211 = arith.mulf %209, %210 : vector<4x1xf32>
    %212 = arith.mulf %206, %206 : vector<4x1xf32>
    %213 = arith.subf %211, %212 : vector<4x1xf32>
    %c2_42 = arith.constant 2 : index
    %c0_43 = arith.constant 0 : index
    %214 = vector.load %arg1[%c2_42, %c0_43] : memref<12x3xf32, #tpu.memory_space<vmem>>, vector<4x1xf32>
    %c2_44 = arith.constant 2 : index
    %c1_45 = arith.constant 1 : index
    %215 = vector.load %arg1[%c2_44, %c1_45] : memref<12x3xf32, #tpu.memory_space<vmem>>, vector<4x1xf32>
    %c2_46 = arith.constant 2 : index
    %c2_47 = arith.constant 2 : index
    %216 = vector.load %arg1[%c2_46, %c2_47] : memref<12x3xf32, #tpu.memory_space<vmem>>, vector<4x1xf32>
    %217 = vector.broadcast %206 : vector<4x1xf32> to vector<4x512xf32>
    %218 = arith.subf %202, %217 : vector<4x512xf32>
    %cst_48 = arith.constant 9.99999974E-6 : f32
    %219 = vector.broadcast %cst_48 : f32 to vector<4x1xf32>
    %220 = arith.addf %213, %219 : vector<4x1xf32>
    %221 = math.rsqrt %220 : vector<4x1xf32>
    %222 = arith.mulf %221, %214 : vector<4x1xf32>
    %223 = vector.broadcast %222 : vector<4x1xf32> to vector<4x512xf32>
    %224 = arith.mulf %218, %223 : vector<4x512xf32>
    %225 = vector.broadcast %215 : vector<4x1xf32> to vector<4x512xf32>
    %226 = arith.addf %224, %225 : vector<4x512xf32>
    %cst_49 = arith.constant 0.000000e+00 : f32
    %227 = vector.broadcast %cst_49 : f32 to vector<4x512xf32>
    %228 = arith.cmpf ogt, %226, %227 : vector<4x512xf32>
    %229 = vector.broadcast %216 : vector<4x1xf32> to vector<4x512xf32>
    %230 = arith.mulf %229, %226 : vector<4x512xf32>
    %231 = arith.select %228, %226, %230 : vector<4x512xi1>, vector<4x512xf32>
    %232 = tpu.concatenate %29, %59, %231 in 0 : vector<1x512xf32>, vector<1x512xf32>, vector<4x512xf32> -> vector<6x512xf32>
    %c0_50 = arith.constant 0 : index
    %c0_51 = arith.constant 0 : index
    %233 = vector.load %arg7[%c0_50, %c0_51] : memref<512x128xf32, #tpu.memory_space<vmem>>, vector<512x128xf32>
    %cst_52 = arith.constant dense<0.000000e+00> : vector<6x128xf32>
    %234 = tpu.matmul %232, %233, %cst_52 {dimension_numbers = #tpu.dot_dimension_numbers<[1], [0], [0], [1], [0, 0, 1, 1], [], []>} : vector<6x512xf32>, vector<512x128xf32>, vector<6x128xf32> -> vector<6x128xf32>
    %235 = vector.extract_strided_slice %234 {offsets = [0, 0], sizes = [1, 128], strides = [1, 1]} : vector<6x128xf32> to vector<1x128xf32>
    %236 = vector.extract_strided_slice %234 {offsets = [1, 0], sizes = [1, 128], strides = [1, 1]} : vector<6x128xf32> to vector<1x128xf32>
    %237 = vector.extract_strided_slice %234 {offsets = [2, 0], sizes = [4, 128], strides = [1, 1]} : vector<6x128xf32> to vector<4x128xf32>
    %238 = tpu.concatenate %235, %237 in 0 : vector<1x128xf32>, vector<4x128xf32> -> vector<5x128xf32>
    %c0_53 = arith.constant 0 : index
    %c0_54 = arith.constant 0 : index
    %239 = vector.load %arg3[%c0_53, %c0_54] : memref<4x5xf32, #tpu.memory_space<vmem>>, vector<4x5xf32>
    %cst_55 = arith.constant 0.000000e+00 : f32
    %240 = vector.broadcast %cst_55 : f32 to vector<4x128xf32>
    %241 = vector.extract_strided_slice %239 {offsets = [0, 0], sizes = [4, 1], strides = [1, 1]} : vector<4x5xf32> to vector<4x1xf32>
    %242 = vector.extract_strided_slice %238 {offsets = [0, 0], sizes = [1, 128], strides = [1, 1]} : vector<5x128xf32> to vector<1x128xf32>
    %243 = vector.broadcast %241 : vector<4x1xf32> to vector<4x128xf32>
    %244 = vector.broadcast %242 : vector<1x128xf32> to vector<4x128xf32>
    %245 = arith.mulf %243, %244 : vector<4x128xf32>
    %246 = arith.addf %240, %245 : vector<4x128xf32>
    %247 = vector.extract_strided_slice %239 {offsets = [0, 1], sizes = [4, 1], strides = [1, 1]} : vector<4x5xf32> to vector<4x1xf32>
    %248 = vector.extract_strided_slice %238 {offsets = [1, 0], sizes = [1, 128], strides = [1, 1]} : vector<5x128xf32> to vector<1x128xf32>
    %249 = vector.broadcast %247 : vector<4x1xf32> to vector<4x128xf32>
    %250 = vector.broadcast %248 : vector<1x128xf32> to vector<4x128xf32>
    %251 = arith.mulf %249, %250 : vector<4x128xf32>
    %252 = arith.addf %246, %251 : vector<4x128xf32>
    %253 = vector.extract_strided_slice %239 {offsets = [0, 2], sizes = [4, 1], strides = [1, 1]} : vector<4x5xf32> to vector<4x1xf32>
    %254 = vector.extract_strided_slice %238 {offsets = [2, 0], sizes = [1, 128], strides = [1, 1]} : vector<5x128xf32> to vector<1x128xf32>
    %255 = vector.broadcast %253 : vector<4x1xf32> to vector<4x128xf32>
    %256 = vector.broadcast %254 : vector<1x128xf32> to vector<4x128xf32>
    %257 = arith.mulf %255, %256 : vector<4x128xf32>
    %258 = arith.addf %252, %257 : vector<4x128xf32>
    %259 = vector.extract_strided_slice %239 {offsets = [0, 3], sizes = [4, 1], strides = [1, 1]} : vector<4x5xf32> to vector<4x1xf32>
    %260 = vector.extract_strided_slice %238 {offsets = [3, 0], sizes = [1, 128], strides = [1, 1]} : vector<5x128xf32> to vector<1x128xf32>
    %261 = vector.broadcast %259 : vector<4x1xf32> to vector<4x128xf32>
    %262 = vector.broadcast %260 : vector<1x128xf32> to vector<4x128xf32>
    %263 = arith.mulf %261, %262 : vector<4x128xf32>
    %264 = arith.addf %258, %263 : vector<4x128xf32>
    %265 = vector.extract_strided_slice %239 {offsets = [0, 4], sizes = [4, 1], strides = [1, 1]} : vector<4x5xf32> to vector<4x1xf32>
    %266 = vector.extract_strided_slice %238 {offsets = [4, 0], sizes = [1, 128], strides = [1, 1]} : vector<5x128xf32> to vector<1x128xf32>
    %267 = vector.broadcast %265 : vector<4x1xf32> to vector<4x128xf32>
    %268 = vector.broadcast %266 : vector<1x128xf32> to vector<4x128xf32>
    %269 = arith.mulf %267, %268 : vector<4x128xf32>
    %270 = arith.addf %264, %269 : vector<4x128xf32>
    %c0_56 = arith.constant 0 : index
    %c0_57 = arith.constant 0 : index
    %271 = vector.load %arg4[%c0_56, %c0_57] : memref<4x1xf32, #tpu.memory_space<vmem>>, vector<4x1xf32>
    %cst_58 = arith.constant 0.000000e+00 : f32
    %272 = vector.broadcast %cst_58 : f32 to vector<4x128xf32>
    %273 = vector.broadcast %271 : vector<4x1xf32> to vector<4x128xf32>
    %274 = vector.broadcast %236 : vector<1x128xf32> to vector<4x128xf32>
    %275 = arith.mulf %273, %274 : vector<4x128xf32>
    %276 = arith.addf %272, %275 : vector<4x128xf32>
    %277 = arith.addf %270, %276 : vector<4x128xf32>
    %cst_59 = arith.constant dense<0.000000e+00> : vector<4xf32>
    %278 = vector.multi_reduction <add>, %277, %cst_59 [1] : vector<4x128xf32> to vector<4xf32>
    %279 = vector.shape_cast %278 : vector<4xf32> to vector<4x1xf32>
    %cst_60 = arith.constant 7.812500e-03 : f32
    %280 = vector.broadcast %cst_60 : f32 to vector<4x1xf32>
    %281 = arith.mulf %279, %280 : vector<4x1xf32>
    %282 = arith.mulf %277, %277 : vector<4x128xf32>
    %cst_61 = arith.constant dense<0.000000e+00> : vector<4xf32>
    %283 = vector.multi_reduction <add>, %282, %cst_61 [1] : vector<4x128xf32> to vector<4xf32>
    %284 = vector.shape_cast %283 : vector<4xf32> to vector<4x1xf32>
    %cst_62 = arith.constant 7.812500e-03 : f32
    %285 = vector.broadcast %cst_62 : f32 to vector<4x1xf32>
    %286 = arith.mulf %284, %285 : vector<4x1xf32>
    %287 = arith.mulf %281, %281 : vector<4x1xf32>
    %288 = arith.subf %286, %287 : vector<4x1xf32>
    %c6_63 = arith.constant 6 : index
    %c0_64 = arith.constant 0 : index
    %289 = vector.load %arg1[%c6_63, %c0_64] : memref<12x3xf32, #tpu.memory_space<vmem>>, vector<4x1xf32>
    %c6_65 = arith.constant 6 : index
    %c1_66 = arith.constant 1 : index
    %290 = vector.load %arg1[%c6_65, %c1_66] : memref<12x3xf32, #tpu.memory_space<vmem>>, vector<4x1xf32>
    %c6_67 = arith.constant 6 : index
    %c2_68 = arith.constant 2 : index
    %291 = vector.load %arg1[%c6_67, %c2_68] : memref<12x3xf32, #tpu.memory_space<vmem>>, vector<4x1xf32>
    %292 = vector.broadcast %281 : vector<4x1xf32> to vector<4x128xf32>
    %293 = arith.subf %277, %292 : vector<4x128xf32>
    %cst_69 = arith.constant 9.99999974E-6 : f32
    %294 = vector.broadcast %cst_69 : f32 to vector<4x1xf32>
    %295 = arith.addf %288, %294 : vector<4x1xf32>
    %296 = math.rsqrt %295 : vector<4x1xf32>
    %297 = arith.mulf %296, %289 : vector<4x1xf32>
    %298 = vector.broadcast %297 : vector<4x1xf32> to vector<4x128xf32>
    %299 = arith.mulf %293, %298 : vector<4x128xf32>
    %300 = vector.broadcast %290 : vector<4x1xf32> to vector<4x128xf32>
    %301 = arith.addf %299, %300 : vector<4x128xf32>
    %cst_70 = arith.constant 0.000000e+00 : f32
    %302 = vector.broadcast %cst_70 : f32 to vector<4x128xf32>
    %303 = arith.cmpf ogt, %301, %302 : vector<4x128xf32>
    %304 = vector.broadcast %291 : vector<4x1xf32> to vector<4x128xf32>
    %305 = arith.mulf %304, %301 : vector<4x128xf32>
    %306 = arith.select %303, %301, %305 : vector<4x128xi1>, vector<4x128xf32>
    %307 = tpu.concatenate %237, %306 in 0 : vector<4x128xf32>, vector<4x128xf32> -> vector<8x128xf32>
    %c0_71 = arith.constant 0 : index
    %c0_72 = arith.constant 0 : index
    %308 = vector.load %arg5[%c0_71, %c0_72] : memref<72x1xf32, #tpu.memory_space<vmem>>, vector<72x1xf32>
    %cst_73 = arith.constant 0.000000e+00 : f32
    %309 = vector.broadcast %cst_73 : f32 to vector<1x128xf32>
    %c9_i32 = arith.constant 9 : i32
    %310 = tpu.dynamic_rotate %307 by %c9_i32 dim 1 : vector<8x128xf32>, i32 -> vector<8x128xf32>
    %c0_74 = arith.constant 0 : index
    %c0_75 = arith.constant 0 : index
    %311 = vector.load %arg9[%c0_74, %c0_75] : memref<9x128xf32, #tpu.memory_space<vmem>>, vector<1x128xf32>
    %312 = vector.broadcast %311 : vector<1x128xf32> to vector<8x128xf32>
    %313 = arith.mulf %310, %312 : vector<8x128xf32>
    %314 = vector.extract_strided_slice %308 {offsets = [0, 0], sizes = [8, 1], strides = [1, 1]} : vector<72x1xf32> to vector<8x1xf32>
    %315 = vector.broadcast %314 : vector<8x1xf32> to vector<8x128xf32>
    %316 = arith.mulf %315, %313 : vector<8x128xf32>
    %cst_76 = arith.constant dense<0.000000e+00> : vector<128xf32>
    %317 = vector.multi_reduction <add>, %316, %cst_76 [0] : vector<8x128xf32> to vector<128xf32>
    %318 = vector.shape_cast %317 : vector<128xf32> to vector<1x128xf32>
    %319 = arith.addf %309, %318 : vector<1x128xf32>
    %c8_i32 = arith.constant 8 : i32
    %320 = tpu.dynamic_rotate %307 by %c8_i32 dim 1 : vector<8x128xf32>, i32 -> vector<8x128xf32>
    %c1_77 = arith.constant 1 : index
    %c0_78 = arith.constant 0 : index
    %321 = vector.load %arg9[%c1_77, %c0_78] : memref<9x128xf32, #tpu.memory_space<vmem>>, vector<1x128xf32>
    %322 = vector.broadcast %321 : vector<1x128xf32> to vector<8x128xf32>
    %323 = arith.mulf %320, %322 : vector<8x128xf32>
    %324 = vector.extract_strided_slice %308 {offsets = [8, 0], sizes = [8, 1], strides = [1, 1]} : vector<72x1xf32> to vector<8x1xf32>
    %325 = vector.broadcast %324 : vector<8x1xf32> to vector<8x128xf32>
    %326 = arith.mulf %325, %323 : vector<8x128xf32>
    %cst_79 = arith.constant dense<0.000000e+00> : vector<128xf32>
    %327 = vector.multi_reduction <add>, %326, %cst_79 [0] : vector<8x128xf32> to vector<128xf32>
    %328 = vector.shape_cast %327 : vector<128xf32> to vector<1x128xf32>
    %329 = arith.addf %319, %328 : vector<1x128xf32>
    %c7_i32 = arith.constant 7 : i32
    %330 = tpu.dynamic_rotate %307 by %c7_i32 dim 1 : vector<8x128xf32>, i32 -> vector<8x128xf32>
    %c2_80 = arith.constant 2 : index
    %c0_81 = arith.constant 0 : index
    %331 = vector.load %arg9[%c2_80, %c0_81] : memref<9x128xf32, #tpu.memory_space<vmem>>, vector<1x128xf32>
    %332 = vector.broadcast %331 : vector<1x128xf32> to vector<8x128xf32>
    %333 = arith.mulf %330, %332 : vector<8x128xf32>
    %334 = vector.extract_strided_slice %308 {offsets = [16, 0], sizes = [8, 1], strides = [1, 1]} : vector<72x1xf32> to vector<8x1xf32>
    %335 = vector.broadcast %334 : vector<8x1xf32> to vector<8x128xf32>
    %336 = arith.mulf %335, %333 : vector<8x128xf32>
    %cst_82 = arith.constant dense<0.000000e+00> : vector<128xf32>
    %337 = vector.multi_reduction <add>, %336, %cst_82 [0] : vector<8x128xf32> to vector<128xf32>
    %338 = vector.shape_cast %337 : vector<128xf32> to vector<1x128xf32>
    %339 = arith.addf %329, %338 : vector<1x128xf32>
    %c1_i32_83 = arith.constant 1 : i32
    %340 = tpu.dynamic_rotate %307 by %c1_i32_83 dim 1 : vector<8x128xf32>, i32 -> vector<8x128xf32>
    %c3_84 = arith.constant 3 : index
    %c0_85 = arith.constant 0 : index
    %341 = vector.load %arg9[%c3_84, %c0_85] : memref<9x128xf32, #tpu.memory_space<vmem>>, vector<1x128xf32>
    %342 = vector.broadcast %341 : vector<1x128xf32> to vector<8x128xf32>
    %343 = arith.mulf %340, %342 : vector<8x128xf32>
    %344 = vector.extract_strided_slice %308 {offsets = [24, 0], sizes = [8, 1], strides = [1, 1]} : vector<72x1xf32> to vector<8x1xf32>
    %345 = vector.broadcast %344 : vector<8x1xf32> to vector<8x128xf32>
    %346 = arith.mulf %345, %343 : vector<8x128xf32>
    %cst_86 = arith.constant dense<0.000000e+00> : vector<128xf32>
    %347 = vector.multi_reduction <add>, %346, %cst_86 [0] : vector<8x128xf32> to vector<128xf32>
    %348 = vector.shape_cast %347 : vector<128xf32> to vector<1x128xf32>
    %349 = arith.addf %339, %348 : vector<1x128xf32>
    %350 = vector.extract_strided_slice %308 {offsets = [32, 0], sizes = [8, 1], strides = [1, 1]} : vector<72x1xf32> to vector<8x1xf32>
    %351 = vector.broadcast %350 : vector<8x1xf32> to vector<8x128xf32>
    %352 = arith.mulf %351, %307 : vector<8x128xf32>
    %cst_87 = arith.constant dense<0.000000e+00> : vector<128xf32>
    %353 = vector.multi_reduction <add>, %352, %cst_87 [0] : vector<8x128xf32> to vector<128xf32>
    %354 = vector.shape_cast %353 : vector<128xf32> to vector<1x128xf32>
    %355 = arith.addf %349, %354 : vector<1x128xf32>
    %c127_i32 = arith.constant 127 : i32
    %356 = tpu.dynamic_rotate %307 by %c127_i32 dim 1 : vector<8x128xf32>, i32 -> vector<8x128xf32>
    %c5_88 = arith.constant 5 : index
    %c0_89 = arith.constant 0 : index
    %357 = vector.load %arg9[%c5_88, %c0_89] : memref<9x128xf32, #tpu.memory_space<vmem>>, vector<1x128xf32>
    %358 = vector.broadcast %357 : vector<1x128xf32> to vector<8x128xf32>
    %359 = arith.mulf %356, %358 : vector<8x128xf32>
    %360 = vector.extract_strided_slice %308 {offsets = [40, 0], sizes = [8, 1], strides = [1, 1]} : vector<72x1xf32> to vector<8x1xf32>
    %361 = vector.broadcast %360 : vector<8x1xf32> to vector<8x128xf32>
    %362 = arith.mulf %361, %359 : vector<8x128xf32>
    %cst_90 = arith.constant dense<0.000000e+00> : vector<128xf32>
    %363 = vector.multi_reduction <add>, %362, %cst_90 [0] : vector<8x128xf32> to vector<128xf32>
    %364 = vector.shape_cast %363 : vector<128xf32> to vector<1x128xf32>
    %365 = arith.addf %355, %364 : vector<1x128xf32>
    %c121_i32 = arith.constant 121 : i32
    %366 = tpu.dynamic_rotate %307 by %c121_i32 dim 1 : vector<8x128xf32>, i32 -> vector<8x128xf32>
    %c6_91 = arith.constant 6 : index
    %c0_92 = arith.constant 0 : index
    %367 = vector.load %arg9[%c6_91, %c0_92] : memref<9x128xf32, #tpu.memory_space<vmem>>, vector<1x128xf32>
    %368 = vector.broadcast %367 : vector<1x128xf32> to vector<8x128xf32>
    %369 = arith.mulf %366, %368 : vector<8x128xf32>
    %370 = vector.extract_strided_slice %308 {offsets = [48, 0], sizes = [8, 1], strides = [1, 1]} : vector<72x1xf32> to vector<8x1xf32>
    %371 = vector.broadcast %370 : vector<8x1xf32> to vector<8x128xf32>
    %372 = arith.mulf %371, %369 : vector<8x128xf32>
    %cst_93 = arith.constant dense<0.000000e+00> : vector<128xf32>
    %373 = vector.multi_reduction <add>, %372, %cst_93 [0] : vector<8x128xf32> to vector<128xf32>
    %374 = vector.shape_cast %373 : vector<128xf32> to vector<1x128xf32>
    %375 = arith.addf %365, %374 : vector<1x128xf32>
    %c120_i32 = arith.constant 120 : i32
    %376 = tpu.dynamic_rotate %307 by %c120_i32 dim 1 : vector<8x128xf32>, i32 -> vector<8x128xf32>
    %c7_94 = arith.constant 7 : index
    %c0_95 = arith.constant 0 : index
    %377 = vector.load %arg9[%c7_94, %c0_95] : memref<9x128xf32, #tpu.memory_space<vmem>>, vector<1x128xf32>
    %378 = vector.broadcast %377 : vector<1x128xf32> to vector<8x128xf32>
    %379 = arith.mulf %376, %378 : vector<8x128xf32>
    %380 = vector.extract_strided_slice %308 {offsets = [56, 0], sizes = [8, 1], strides = [1, 1]} : vector<72x1xf32> to vector<8x1xf32>
    %381 = vector.broadcast %380 : vector<8x1xf32> to vector<8x128xf32>
    %382 = arith.mulf %381, %379 : vector<8x128xf32>
    %cst_96 = arith.constant dense<0.000000e+00> : vector<128xf32>
    %383 = vector.multi_reduction <add>, %382, %cst_96 [0] : vector<8x128xf32> to vector<128xf32>
    %384 = vector.shape_cast %383 : vector<128xf32> to vector<1x128xf32>
    %385 = arith.addf %375, %384 : vector<1x128xf32>
    %c119_i32 = arith.constant 119 : i32
    %386 = tpu.dynamic_rotate %307 by %c119_i32 dim 1 : vector<8x128xf32>, i32 -> vector<8x128xf32>
    %c8_97 = arith.constant 8 : index
    %c0_98 = arith.constant 0 : index
    %387 = vector.load %arg9[%c8_97, %c0_98] : memref<9x128xf32, #tpu.memory_space<vmem>>, vector<1x128xf32>
    %388 = vector.broadcast %387 : vector<1x128xf32> to vector<8x128xf32>
    %389 = arith.mulf %386, %388 : vector<8x128xf32>
    %390 = vector.extract_strided_slice %308 {offsets = [64, 0], sizes = [8, 1], strides = [1, 1]} : vector<72x1xf32> to vector<8x1xf32>
    %391 = vector.broadcast %390 : vector<8x1xf32> to vector<8x128xf32>
    %392 = arith.mulf %391, %389 : vector<8x128xf32>
    %cst_99 = arith.constant dense<0.000000e+00> : vector<128xf32>
    %393 = vector.multi_reduction <add>, %392, %cst_99 [0] : vector<8x128xf32> to vector<128xf32>
    %394 = vector.shape_cast %393 : vector<128xf32> to vector<1x128xf32>
    %395 = arith.addf %385, %394 : vector<1x128xf32>
    %cst_100 = arith.constant dense<0.000000e+00> : vector<1xf32>
    %396 = vector.multi_reduction <add>, %395, %cst_100 [1] : vector<1x128xf32> to vector<1xf32>
    %397 = vector.shape_cast %396 : vector<1xf32> to vector<1x1xf32>
    %cst_101 = arith.constant 7.812500e-03 : f32
    %398 = vector.broadcast %cst_101 : f32 to vector<1x1xf32>
    %399 = arith.mulf %397, %398 : vector<1x1xf32>
    %400 = arith.mulf %395, %395 : vector<1x128xf32>
    %cst_102 = arith.constant dense<0.000000e+00> : vector<1xf32>
    %401 = vector.multi_reduction <add>, %400, %cst_102 [1] : vector<1x128xf32> to vector<1xf32>
    %402 = vector.shape_cast %401 : vector<1xf32> to vector<1x1xf32>
    %cst_103 = arith.constant 7.812500e-03 : f32
    %403 = vector.broadcast %cst_103 : f32 to vector<1x1xf32>
    %404 = arith.mulf %402, %403 : vector<1x1xf32>
    %405 = arith.mulf %399, %399 : vector<1x1xf32>
    %406 = arith.subf %404, %405 : vector<1x1xf32>
    %c10 = arith.constant 10 : index
    %c0_104 = arith.constant 0 : index
    %407 = vector.load %arg1[%c10, %c0_104] : memref<12x3xf32, #tpu.memory_space<vmem>>, vector<1x1xf32>
    %c10_105 = arith.constant 10 : index
    %c1_106 = arith.constant 1 : index
    %408 = vector.load %arg1[%c10_105, %c1_106] : memref<12x3xf32, #tpu.memory_space<vmem>>, vector<1x1xf32>
    %c10_107 = arith.constant 10 : index
    %c2_108 = arith.constant 2 : index
    %409 = vector.load %arg1[%c10_107, %c2_108] : memref<12x3xf32, #tpu.memory_space<vmem>>, vector<1x1xf32>
    %410 = vector.broadcast %399 : vector<1x1xf32> to vector<1x128xf32>
    %411 = arith.subf %395, %410 : vector<1x128xf32>
    %cst_109 = arith.constant 9.99999974E-6 : f32
    %412 = vector.broadcast %cst_109 : f32 to vector<1x1xf32>
    %413 = arith.addf %406, %412 : vector<1x1xf32>
    %414 = math.rsqrt %413 : vector<1x1xf32>
    %415 = arith.mulf %414, %407 : vector<1x1xf32>
    %416 = vector.broadcast %415 : vector<1x1xf32> to vector<1x128xf32>
    %417 = arith.mulf %411, %416 : vector<1x128xf32>
    %418 = vector.broadcast %408 : vector<1x1xf32> to vector<1x128xf32>
    %419 = arith.addf %417, %418 : vector<1x128xf32>
    %cst_110 = arith.constant 0.000000e+00 : f32
    %420 = vector.broadcast %cst_110 : f32 to vector<1x128xf32>
    %421 = arith.cmpf ogt, %419, %420 : vector<1x128xf32>
    %422 = vector.broadcast %409 : vector<1x1xf32> to vector<1x128xf32>
    %423 = arith.mulf %422, %419 : vector<1x128xf32>
    %424 = arith.select %421, %419, %423 : vector<1x128xi1>, vector<1x128xf32>
    %425 = tpu.concatenate %236, %306 in 0 : vector<1x128xf32>, vector<4x128xf32> -> vector<5x128xf32>
    %c0_111 = arith.constant 0 : index
    %c0_112 = arith.constant 0 : index
    %426 = vector.load %arg6[%c0_111, %c0_112] : memref<5x1xf32, #tpu.memory_space<vmem>>, vector<5x1xf32>
    %cst_113 = arith.constant 0.000000e+00 : f32
    %427 = vector.broadcast %cst_113 : f32 to vector<1x128xf32>
    %428 = vector.broadcast %426 : vector<5x1xf32> to vector<5x128xf32>
    %429 = arith.mulf %428, %425 : vector<5x128xf32>
    %cst_114 = arith.constant dense<0.000000e+00> : vector<128xf32>
    %430 = vector.multi_reduction <add>, %429, %cst_114 [0] : vector<5x128xf32> to vector<128xf32>
    %431 = vector.shape_cast %430 : vector<128xf32> to vector<1x128xf32>
    %432 = arith.addf %427, %431 : vector<1x128xf32>
    %cst_115 = arith.constant dense<0.000000e+00> : vector<1xf32>
    %433 = vector.multi_reduction <add>, %432, %cst_115 [1] : vector<1x128xf32> to vector<1xf32>
    %434 = vector.shape_cast %433 : vector<1xf32> to vector<1x1xf32>
    %cst_116 = arith.constant 7.812500e-03 : f32
    %435 = vector.broadcast %cst_116 : f32 to vector<1x1xf32>
    %436 = arith.mulf %434, %435 : vector<1x1xf32>
    %437 = arith.mulf %432, %432 : vector<1x128xf32>
    %cst_117 = arith.constant dense<0.000000e+00> : vector<1xf32>
    %438 = vector.multi_reduction <add>, %437, %cst_117 [1] : vector<1x128xf32> to vector<1xf32>
    %439 = vector.shape_cast %438 : vector<1xf32> to vector<1x1xf32>
    %cst_118 = arith.constant 7.812500e-03 : f32
    %440 = vector.broadcast %cst_118 : f32 to vector<1x1xf32>
    %441 = arith.mulf %439, %440 : vector<1x1xf32>
    %442 = arith.mulf %436, %436 : vector<1x1xf32>
    %443 = arith.subf %441, %442 : vector<1x1xf32>
    %c11 = arith.constant 11 : index
    %c0_119 = arith.constant 0 : index
    %444 = vector.load %arg1[%c11, %c0_119] : memref<12x3xf32, #tpu.memory_space<vmem>>, vector<1x1xf32>
    %c11_120 = arith.constant 11 : index
    %c1_121 = arith.constant 1 : index
    %445 = vector.load %arg1[%c11_120, %c1_121] : memref<12x3xf32, #tpu.memory_space<vmem>>, vector<1x1xf32>
    %c11_122 = arith.constant 11 : index
    %c2_123 = arith.constant 2 : index
    %446 = vector.load %arg1[%c11_122, %c2_123] : memref<12x3xf32, #tpu.memory_space<vmem>>, vector<1x1xf32>
    %447 = vector.broadcast %436 : vector<1x1xf32> to vector<1x128xf32>
    %448 = arith.subf %432, %447 : vector<1x128xf32>
    %cst_124 = arith.constant 9.99999974E-6 : f32
    %449 = vector.broadcast %cst_124 : f32 to vector<1x1xf32>
    %450 = arith.addf %443, %449 : vector<1x1xf32>
    %451 = math.rsqrt %450 : vector<1x1xf32>
    %452 = arith.mulf %451, %444 : vector<1x1xf32>
    %453 = vector.broadcast %452 : vector<1x1xf32> to vector<1x128xf32>
    %454 = arith.mulf %448, %453 : vector<1x128xf32>
    %455 = vector.broadcast %445 : vector<1x1xf32> to vector<1x128xf32>
    %456 = arith.addf %454, %455 : vector<1x128xf32>
    %cst_125 = arith.constant 0.000000e+00 : f32
    %457 = vector.broadcast %cst_125 : f32 to vector<1x128xf32>
    %458 = arith.cmpf ogt, %456, %457 : vector<1x128xf32>
    %459 = vector.broadcast %446 : vector<1x1xf32> to vector<1x128xf32>
    %460 = arith.mulf %459, %456 : vector<1x128xf32>
    %461 = arith.select %458, %456, %460 : vector<1x128xi1>, vector<1x128xf32>
    %462 = tpu.concatenate %424, %461 in 0 : vector<1x128xf32>, vector<1x128xf32> -> vector<2x128xf32>
    %c0_126 = arith.constant 0 : index
    %c0_127 = arith.constant 0 : index
    %463 = vector.load %arg10[%c0_126, %c0_127] : memref<128x2xf32, #tpu.memory_space<vmem>>, vector<128x2xf32>
    %cst_128 = arith.constant dense<0.000000e+00> : vector<2x2xf32>
    %464 = tpu.matmul %462, %463, %cst_128 {dimension_numbers = #tpu.dot_dimension_numbers<[1], [0], [0], [1], [0, 0, 1, 1], [], []>} : vector<2x128xf32>, vector<128x2xf32>, vector<2x2xf32> -> vector<2x2xf32>
    %cst_129 = arith.constant dense<0xFF800000> : vector<2xf32>
    %465 = vector.multi_reduction <maximumf>, %464, %cst_129 [0] : vector<2x2xf32> to vector<2xf32>
    %466 = vector.shape_cast %465 : vector<2xf32> to vector<1x2xf32>
    %467 = vector.broadcast %466 : vector<1x2xf32> to vector<2x2xf32>
    %468 = arith.subf %464, %467 : vector<2x2xf32>
    %469 = math.exp %468 : vector<2x2xf32>
    %cst_130 = arith.constant dense<0.000000e+00> : vector<2xf32>
    %470 = vector.multi_reduction <add>, %469, %cst_130 [0] : vector<2x2xf32> to vector<2xf32>
    %471 = vector.shape_cast %470 : vector<2xf32> to vector<1x2xf32>
    %472 = vector.broadcast %471 : vector<1x2xf32> to vector<2x2xf32>
    %473 = arith.divf %469, %472 : vector<2x2xf32>
    %c0_131 = arith.constant 0 : index
    %c0_132 = arith.constant 0 : index
    %474 = vector.load %arg11[%c0_131, %c0_132] : memref<2x2xf32, #tpu.memory_space<vmem>>, vector<2x2xf32>
    tpu.vector_store %arg11[%c0_131, %c0_132], %473 {strides = array<i32>} : memref<2x2xf32, #tpu.memory_space<vmem>>, vector<2x2xf32>,
    return
  }
}

</mosaic_0001>

<bundles_post_ra>
// kernel: _lambda_.1
= control target key start
LH: loop header
LB: loop body
LE: loop exit
PB: predicated region body
PF: predicated region fallthrough
CT: control target
= control target key end

     0   :  { %16 = vsyncpa [#allocation3], 0  ;;  %s2375_s17 = smov [#allocation2]   ;;  %s3368_s0 = inlined_call_operand.vmem [shape: f32[2,512], index: 0, kind: input, shape index: {}]   ;;  %s3369_s1 = inlined_call_operand.vmem [shape: f32[12,3], index: 1, kind: input, shape index: {}]   ;;  %s3370_s2 = inlined_call_operand.vmem [shape: f32[4,18], index: 2, kind: input, shape index: {}]   ;;  %s3371_s3 = inlined_call_operand.vmem [shape: f32[4,5], index: 3, kind: input, shape index: {}]   ;;  %s3372_s4 = inlined_call_operand.vmem [shape: f32[4,1], index: 4, kind: input, shape index: {}]   ;;  %s3373_s5 = inlined_call_operand.vmem [shape: f32[72,1], index: 5, kind: input, shape index: {}]   ;;  %s3374_s6 = inlined_call_operand.vmem [shape: f32[5,1], index: 6, kind: input, shape index: {}]   ;;  %s3375_s7 = inlined_call_operand.hbm [shape: f32[512,128], index: 7, kind: input, shape index: {}]   ;;  %s3376_s8 = inlined_call_operand.vmem [shape: f32[9,512], index: 8, kind: input, shape index: {}]   ;;  %s3377_s9 = inlined_call_operand.vmem [shape: f32[9,128], index: 9, kind: input, shape index: {}]   ;;  %s3378_s10 = inlined_call_operand.vmem [shape: f32[128,2], index: 10, kind: input, shape index: {}]   ;;  %s3379_s11 = inlined_call_operand.vmem [shape: f32[2,2], index: 11, kind: output, shape index: {}]  }
   0x1   :  { %s36_s18 = sshll.u32 %s2375_s17, 4  ;;  %s2351_s21 = scalar_lea.hbm %s3375_s7, 8192  ;;  %s37_s18 = int_to_ptr.vmem [resolvable:$true] %s36_s18 }
   0x2   :  { %p2352_p0 = scmp.ne.s32.totalorder %s3375_s7, %s2351_s21  ;;  %p2355_p1 = scmp.lt.u32.totalorder %s2351_s21, %s3375_s7 }
   0x4   :  { %p2357_p2 = pnand %p2355_p1, %p2352_p0 }
   0x6   :  { %2360 = shalt.err (!%p2357_p2)
}
   0x7   :  { %s2361_s26 = scalar_lea.vmem %s37_s18, 8192  ;;  %p2366_p4 = scmp.lt.s32.totalorder %s37_s18, %s37_s18 }
   0x8   :  { %p2362_p3 = scmp.ne.s32.totalorder %s37_s18, %s2361_s26  ;;  %p2367_p5 = scmp.lt.s32.totalorder %s2361_s26, %s2361_s26 }
   0xa   :  { %p2368_p6 = por %p2367_p5, %p2366_p4 }
   0xc   :  { %p2369_p7 = pnand %p2368_p6, %p2362_p3 }
   0xe   :  { %2372 = shalt.err (!%p2369_p7)
}
   0xf   :  { %s2376_s27 = smov 128   ;;  %s2377_s28 = smov 8  }
  0x10   :  { %42 = dma.hbm_to_vmem [thread:$0]  %s3375_s7, 8192, %s37_s18, [#allocation3], %s2376_s27, %s2376_s27, %s2377_s28  }
  0x11   :  { %2373 = dma.done.wait [#allocation3], 8192  }
  0x12   :  { %2374 = vsyncadd [#allocation3], 4294959104  ;;  %v54_v0 = vlaneseq  ;;  %vm74_vm0 = vcmask 1040384   ;;  %v2504_v6 = vld [vmem:[%s3368_s0] ss:$2 sm:$0xf] }
  0x13   :  { %v2509_v7 = vld [vmem:[%s3368_s0 + $0x1] ss:$2 sm:$0xf]  ;;  %v85_v12 = vmul.f32 %v2504_v6, %v2504_v6  ;;  %v3382_v54 = vmov 1   ;;  %v119_v55 = vld [vmem:[%s3369_s1] sm:$0x1] }
  0x14   :  { %v2487_v1 = vshrl.u32 %v54_v0, 7  ;;  %v243_v38 = vmul.f32 %v2509_v7, %v2509_v7  ;;  %2297 = vset.pattern.permute.xlu1 %v3382_v54  ;;  %v277_v56 = vld [vmem:[%s3369_s1 + $0x1] sm:$0x1]  ;;  %v3384_v57 = vmov 0   ;;  %s2398_s20 = smov 16   ;;  %s2399_s21 = smov 15  }
  0x15   :  { %2296 = vset.pattern.permute.xlu0 %v3384_v57  ;;  %s2400_s22 = smov 1   ;;  %s2401_s23 = smov 127   ;;  %vm1241_vm11 = vcmask 1043456   ;;  %vm1322_vm12 = vcmask 1041408  }
  0x16   :  { %3392 = vst [vmem:[#allocation5_spill] sm:$0xff] %v2487_v1  ;;  %v2490_v2 = vsub.s32 0, %v2487_v1  ;;  %v2493_v3 = vsub.s32 1, %v2487_v1  ;;  %v2496_v4 = vsub.s32 2, %v2487_v1  ;;  %v2499_v5 = vsub.s32 3, %v2487_v1  ;;  %s2402_s24 = smov 113  }
  0x17   :  { %s2403_s25 = smov 112   ;;  %s2404_s26 = smov 111  }
  0x18   :  { %v57_v8 = vrot.slane %v2504_v6, %v2490_v2  ;;  %v61_v9 = vrot.slane %v2504_v6, %v2493_v3  ;;  %v65_v10 = vrot.slane %v2504_v6, %v2496_v4  ;;  %v69_v11 = vrot.slane %v2504_v6, %v2499_v5  ;;  %s2406_s29 = smov 7   ;;  %s2408_s30 = smov 121  }
  0x19   :  { %v216_v13 = vrot.slane %v2509_v7, %v2490_v2  ;;  %v220_v14 = vrot.slane %v2509_v7, %v2493_v3  ;;  %v224_v15 = vrot.slane %v2509_v7, %v2496_v4  ;;  %v90_v21 = vrot.slane %v85_v12, %v2490_v2  ;;  %s2409_s7 = smov 119  }
  0x1a   :  { %v75_v16 = vsel %vm74_vm0, %v57_v8, 0.0  ;;  %v76_v17 = vsel %vm74_vm0, %v61_v9, 0.0  ;;  %v78_v18 = vsel %vm74_vm0, %v65_v10, 0.0  ;;  %v80_v19 = vsel %vm74_vm0, %v69_v11, 0.0 }
  0x1b   :  { %v77_v20 = vadd.f32 %v76_v17, %v75_v16  ;;  %v94_v22 = vrot.slane %v85_v12, %v2493_v3  ;;  %v98_v23 = vrot.slane %v85_v12, %v2496_v4  ;;  %v102_v24 = vrot.slane %v85_v12, %v2499_v5 }
  0x1c   :  { %v228_v25 = vrot.slane %v2509_v7, %v2499_v5  ;;  %v233_v26 = vsel %vm74_vm0, %v216_v13, 0.0  ;;  %v234_v27 = vsel %vm74_vm0, %v220_v14, 0.0  ;;  %v107_v29 = vsel %vm74_vm0, %v90_v21, 0.0 }
  0x1d   :  { %v79_v28 = vadd.f32 %v78_v18, %v77_v20  ;;  %v108_v30 = vsel %vm74_vm0, %v94_v22, 0.0  ;;  %v110_v31 = vsel %vm74_vm0, %v98_v23, 0.0  ;;  %v235_v33 = vadd.f32 %v234_v27, %v233_v26  ;;  %v2575_v18 = vld [vmem:[%s3370_s2] sm:$0xf]  ;;  %s2397_s2 = smov 17  }
  0x1e   :  { %v109_v32 = vadd.f32 %v108_v30, %v107_v29  ;;  %v236_v34 = vsel %vm74_vm0, %v224_v15, 0.0  ;;  %v112_v36 = vsel %vm74_vm0, %v102_v24, 0.0  ;;  %v238_v37 = vsel %vm74_vm0, %v228_v25, 0.0 }
  0x1f   :  { %v81_v35 = vadd.f32 %v80_v19, %v79_v28  ;;  %v237_v40 = vadd.f32 %v236_v34, %v235_v33  ;;  %v248_v41 = vrot.slane %v243_v38, %v2490_v2  ;;  %v252_v42 = vrot.slane %v243_v38, %v2493_v3 }
  0x20   :  { %v111_v39 = vadd.f32 %v110_v31, %v109_v32  ;;  %v256_v43 = vrot.slane %v243_v38, %v2496_v4  ;;  %v260_v44 = vrot.slane %v243_v38, %v2499_v5  ;;  %v3386_v21 = vmov 2  }
  0x21   :  { %82 = vadd.xlane.f32.xlu0 %v81_v35  ;;  %v239_v46 = vadd.f32 %v238_v37, %v237_v40  ;;  %v265_v47 = vsel %vm74_vm0, %v248_v41, 0.0  ;;  %v266_v48 = vsel %vm74_vm0, %v252_v42, 0.0  ;;  %v3381_v22 = vmov 3  }
  0x22   :  { %v113_v45 = vadd.f32 %v112_v36, %v111_v39  ;;  %v268_v49 = vsel %vm74_vm0, %v256_v43, 0.0  ;;  %v267_v50 = vadd.f32 %v266_v48, %v265_v47  ;;  %v270_v51 = vsel %vm74_vm0, %v260_v44, 0.0 }
  0x23   :  { %v2382_v23 = vmov 9   ;;  %v2383_v24 = vmov 11   ;;  %v3380_v25 = vmov 4   ;;  %v2385_v26 = vmov 5  }
  0x24   :  { %114 = vadd.xlane.f32.xlu1 %v113_v45  ;;  %v269_v52 = vadd.f32 %v268_v49, %v267_v50  ;;  %v2386_v27 = vmov 6   ;;  %v2387_v28 = vmov 7   ;;  %v2388_v29 = vmov 8  }
  0x25   :  { %240 = vadd.xlane.f32.xlu0 %v239_v46  ;;  %v2389_v30 = vmov 10   ;;  %v2390_v31 = vmov 12   ;;  %v2391_v32 = vmov 13   ;;  %v2392_v33 = vmov 14  }
  0x26   :  { %v271_v53 = vadd.f32 %v270_v51, %v269_v52  ;;  %v2393_v34 = vmov 15   ;;  %v2394_v35 = vmov 16   ;;  %v2395_v36 = vmov 17  }
  0x27   :  { %v2396_v46 = vmov 1966171168  }
  0x28   :  { %272 = vadd.xlane.f32.xlu1 %v271_v53  ;;  %v187_v47 = vunpack.c.l.s4 %v2396_v46 }
  0x2a   :  { %v188_v52 = vunpack.c.0.s8 %v187_v47 }
  0x39   :  { %142 = vperm.xlu1 %2297, %v119_v55  }
  0x3d   :  { %300 = vperm.xlu1 %2297, %v277_v56  }
  0x41   :  { %2298 = vset.pattern.permute.xlu1 %v3384_v57 }
  0xae   :  { %v83_v58 = vpop.xlane.xlu0 %82 }
  0xaf   :  { %v2564_v59 = vmul.f32 0.001953125, %v83_v58 }
  0xb1   :  { %v117_v60 = vmul.f32 %v2564_v59, %v2564_v59  ;;  %v115_v61 = vpop.xlane.xlu1 %114  ;;  %v124_v38 = vrot.slane %v2564_v59, %v2490_v2 }
  0xb2   :  { %v116_v62 = vmul.f32 0.001953125, %v115_v61  ;;  %v241_v63 = vpop.xlane.xlu0 %240  ;;  %v191_v61 = vsub.s32 %v188_v52, %v2487_v1 }
  0xb3   :  { %v2568_v8 = vmul.f32 0.001953125, %v241_v63  ;;  %v126_v40 = vsub.f32 %v2504_v6, %v124_v38 }
  0xb4   :  { %v118_v9 = vsub.f32 %v116_v62, %v117_v60 }
  0xb5   :  { %v275_v11 = vmul.f32 %v2568_v8, %v2568_v8  ;;  %v273_v12 = vpop.xlane.xlu1 %272  ;;  %v282_v43 = vrot.slane %v2568_v8, %v2490_v2 }
  0xb6   :  { %v127_v10 = vadd.f32 1e-05, %v118_v9  ;;  %v274_v13 = vmul.f32 0.001953125, %v273_v12 }
  0xb7   :  { %v284_v50 = vsub.f32 %v2509_v7, %v282_v43 }
  0xb8   :  { %2335 = vrsqrt.f32 %v127_v10  ;;  %v276_v14 = vsub.f32 %v274_v13, %v275_v11 }
  0xb9   :  { %v143_v37 = vpop.permute.xlu1 %142 }
  0xba   :  { %v285_v15 = vadd.f32 1e-05, %v276_v14  ;;  %v147_v44 = vrot.slane %v143_v37, %v2490_v2 }
  0xbc   :  { %2337 = vrsqrt.f32 %v285_v15 }
  0xbd   :  { %v301_v42 = vpop.permute.xlu1 %300 }
  0xbe   :  { %v305_v58 = vrot.slane %v301_v42, %v2490_v2 }
  0xc2   :  { %v2336_v16 = vpop.eup %2335 }
  0xc3   :  { %v129_v17 = vmul.f32 %v2336_v16, %v119_v55 }
  0xc5   :  { %132 = vperm.xlu0 %2296, %v129_v17  }
  0xc6   :  { %v2338_v19 = vpop.eup %2337 }
  0xc7   :  { %v287_v20 = vmul.f32 %v2338_v19, %v277_v56 }
  0xc9   :  { %2302 = vset.pattern.permute.xlu0 %v3386_v21  ;;  %290 = vperm.xlu1 %2298, %v287_v20  }
  0xca   :  { %554 = vperm.xlu0 %2302, %v2575_v18  }
  0xcd   :  { %2299 = vset.pattern.permute.xlu1 %v3386_v21 }
  0xce   :  { %2303 = vset.pattern.permute.xlu0 %v3381_v22  ;;  %152 = vperm.xlu1 %2299, %v119_v55  }
  0xcf   :  { %582 = vperm.xlu0 %2303, %v2575_v18  }
  0xd2   :  { %310 = vperm.xlu1 %2299, %v277_v56  }
  0xd3   :  { %2309 = vset.pattern.permute.xlu0 %v2382_v23 }
  0xd4   :  { %830 = vperm.xlu0 %2309, %v2575_v18  }
  0xd6   :  { %2300 = vset.pattern.permute.xlu1 %v3384_v57 }
  0xd7   :  { %458 = vperm.xlu1 %2300, %v2575_v18  }
  0xd8   :  { %2311 = vset.pattern.permute.xlu0 %v2383_v24 }
  0xd9   :  { %926 = vperm.xlu0 %2311, %v2575_v18  }
  0xdb   :  { %2301 = vset.pattern.permute.xlu1 %v3382_v54 }
  0xdc   :  { %486 = vperm.xlu1 %2301, %v2575_v18  }
  0xdd   :  { %2318 = vset.pattern.permute.xlu0 %v3384_v57 }
  0xe0   :  { %2304 = vset.pattern.permute.xlu1 %v3380_v25 }
  0xe1   :  { %650 = vperm.xlu1 %2304, %v2575_v18  }
  0xe5   :  { %2305 = vset.pattern.permute.xlu1 %v2385_v26 }
  0xe6   :  { %678 = vperm.xlu1 %2305, %v2575_v18  }
  0xea   :  { %2306 = vset.pattern.permute.xlu1 %v2386_v27 }
  0xeb   :  { %746 = vperm.xlu1 %2306, %v2575_v18  }
  0xef   :  { %2307 = vset.pattern.permute.xlu1 %v2387_v28 }
  0xf0   :  { %774 = vperm.xlu1 %2307, %v2575_v18  }
  0xf4   :  { %2308 = vset.pattern.permute.xlu1 %v2388_v29 }
  0xf5   :  { %802 = vperm.xlu1 %2308, %v2575_v18  }
  0xf9   :  { %2310 = vset.pattern.permute.xlu1 %v2389_v30 }
  0xfa   :  { %898 = vperm.xlu1 %2310, %v2575_v18  }
  0xfe   :  { %2312 = vset.pattern.permute.xlu1 %v2390_v31 }
  0xff   :  { %994 = vperm.xlu1 %2312, %v2575_v18  }
 0x103   :  { %2313 = vset.pattern.permute.xlu1 %v2391_v32 }
 0x104   :  { %1022 = vperm.xlu1 %2313, %v2575_v18  }
 0x108   :  { %2314 = vset.pattern.permute.xlu1 %v2392_v33 }
 0x109   :  { %1090 = vperm.xlu1 %2314, %v2575_v18  }
 0x10d   :  { %2315 = vset.pattern.permute.xlu1 %v2393_v34 }
 0x10e   :  { %1118 = vperm.xlu1 %2315, %v2575_v18  }
 0x112   :  { %2316 = vset.pattern.permute.xlu1 %v2394_v35 }
 0x113   :  { %1186 = vperm.xlu1 %2316, %v2575_v18  }
 0x117   :  { %2317 = vset.pattern.permute.xlu1 %v2395_v36 }
 0x144   :  { %v133_v39 = vpop.permute.xlu0 %132 }
 0x145   :  { %v137_v41 = vrot.slane %v133_v39, %v2490_v2 }
 0x147   :  { %v139_v45 = vmul.f32 %v137_v41, %v126_v40 }
 0x148   :  { %v291_v49 = vpop.permute.xlu1 %290 }
 0x149   :  { %v149_v48 = vadd.f32 %v147_v44, %v139_v45  ;;  %v295_v51 = vrot.slane %v291_v49, %v2490_v2 }
 0x14b   :  { %v159_v6 = vrot.slane %v149_v48, %v2490_v2  ;;  %v163_v53 = vrot.slane %v149_v48, %v2493_v3  ;;  %v167_v55 = vrot.slane %v149_v48, %v2496_v4  ;;  %v171_v56 = vrot.slane %v149_v48, %v2499_v5 }
 0x14c   :  { %v297_v59 = vmul.f32 %v295_v51, %v284_v50  ;;  %vm150_vm1 = vcmp.gt.f32.partialorder %v149_v48, 0.0 }
 0x14d   :  { %v153_v62 = vpop.permute.xlu1 %152 }
 0x14e   :  { %v307_v60 = vadd.f32 %v305_v58, %v297_v59  ;;  %v176_v63 = vmul.f32 %v159_v6, %v153_v62  ;;  %v177_v7 = vmul.f32 %v163_v53, %v153_v62  ;;  %v178_v8 = vmul.f32 %v167_v55, %v153_v62 }
 0x14f   :  { %v179_v9 = vmul.f32 %v171_v56, %v153_v62 }
 0x150   :  { %v317_v10 = vrot.slane %v307_v60, %v2490_v2  ;;  %v321_v11 = vrot.slane %v307_v60, %v2493_v3  ;;  %v325_v12 = vrot.slane %v307_v60, %v2496_v4  ;;  %v184_v13 = vcombine.low %v176_v63, %v177_v7 }
 0x151   :  { %v185_v14 = vcombine.low %v178_v8, %v179_v9  ;;  %v329_v15 = vrot.slane %v307_v60, %v2499_v5  ;;  %v311_v16 = vpop.permute.xlu1 %310  ;;  %vm308_vm2 = vcmp.gt.f32.partialorder %v307_v60, 0.0  ;;  %v2713_v9 = vand.u32 127, %v54_v0 }
 0x152   :  { %v192_v17 = vrot.slane %v184_v13, %v191_v61  ;;  %v334_v20 = vmul.f32 %v317_v10, %v311_v16  ;;  %v335_v23 = vmul.f32 %v321_v11, %v311_v16  ;;  %v336_v24 = vmul.f32 %v325_v12, %v311_v16  ;;  %v2718_v10 = vld [vmem:[%s3376_s8] ss:$8 sm:$0xf] }
 0x153   :  { %v199_v19 = vrot.slane %v185_v14, %v191_v61  ;;  %v337_v26 = vmul.f32 %v329_v15, %v311_v16  ;;  %vm425_vm3 = vcmp.lt.s32.totalorder %v2713_v9, 17  ;;  %v439_v0 = vrot.slane %v2718_v10, %v2493_v3 }
 0x154   :  { %v342_v28 = vcombine.low %v334_v20, %v335_v23  ;;  %v443_v20 = vrot.slane %v2718_v10, %v2496_v4  ;;  %v447_v23 = vrot.slane %v2718_v10, %v2499_v5  ;;  %vm521_vm4 = vcmp.lt.s32.totalorder %v2713_v9, 16 }
 0x155   :  { %v200_v27 = vcombine.low %v192_v17, %v199_v19  ;;  %v343_v29 = vcombine.low %v336_v24, %v337_v26  ;;  %v435_v19 = vrot.slane %v2718_v10, %v2490_v2  ;;  %v2742_v24 = vld [vmem:[%s3376_s8 + $0x1] ss:$8 sm:$0xf]  ;;  %v2747_v26 = vld [vmem:[%s3376_s8 + $0x2] ss:$8 sm:$0xf] }
 0x156   :  { %v350_v31 = vrot.slane %v342_v28, %v191_v61  ;;  %v2667_v49 = vpop.permute.xlu1 %458  ;;  %vm617_vm5 = vcmp.lt.s32.totalorder %v2713_v9, 15  ;;  %vm713_vm6 = vcmp.lt.s32.totalorder %v2713_v9, 1  ;;  %vm865_vm7 = vcmp.lt.s32.totalorder %v2713_v9, 127 }
 0x157   :  { %v207_v30 = vrot.slane %v200_v27, %v191_v61  ;;  %v357_v32 = vrot.slane %v343_v29, %v191_v61  ;;  %vm961_vm8 = vcmp.lt.s32.totalorder %v2713_v9, 113  ;;  %vm1057_vm9 = vcmp.lt.s32.totalorder %v2713_v9, 112 }
 0x158   :  { %vm1153_vm10 = vcmp.lt.s32.totalorder %v2713_v9, 111 }
 0x159   :  { %v209_v33 = vsel %vm150_vm1, %v149_v48, %v207_v30  ;;  %v358_v34 = vcombine.low %v350_v31, %v357_v32 }
 0x15a   :  { %v372_v36 = vrot.slane %v209_v33, %v2490_v2  ;;  %v376_v37 = vrot.slane %v209_v33, %v2493_v3  ;;  %v380_v38 = vrot.slane %v209_v33, %v2496_v4  ;;  %v384_v39 = vrot.slane %v209_v33, %v2499_v5 }
 0x15b   :  { %v365_v35 = vrot.slane %v358_v34, %v191_v61  ;;  %v2672_v50 = vpop.permute.xlu1 %486 }
 0x15d   :  { %v367_v40 = vsel %vm308_vm2, %v307_v60, %v365_v35  ;;  %v2769_v35 = vld [vmem:[%s3376_s8 + $0x3] ss:$8 sm:$0xf] }
 0x15e   :  { %v393_v41 = vrot.slane %v367_v40, %v2490_v2  ;;  %v397_v42 = vrot.slane %v367_v40, %v2493_v3  ;;  %v401_v43 = vrot.slane %v367_v40, %v2496_v4  ;;  %v405_v44 = vrot.slane %v367_v40, %v2499_v5 }
 0x160   :  { %v2629_v45 = vsel %vm74_vm0, %v372_v36, %v393_v41  ;;  %v2632_v46 = vsel %vm74_vm0, %v376_v37, %v397_v42  ;;  %v2635_v47 = vsel %vm74_vm0, %v380_v38, %v401_v43  ;;  %v2638_v48 = vsel %vm74_vm0, %v384_v39, %v405_v44  ;;  %v2678_v51 = vpop.permute.xlu1 %650 }
 0x161   :  { %3393 = vst [vmem:[#allocation6_spill] sm:$0xff] %v2629_v45  ;;  %3394 = vst [vmem:[#allocation7_spill] sm:$0xff] %v2635_v47  ;;  %417 = vrot.lane.b32.xlu0 %v2632_v46, %s2397_s2  ;;  %415 = vrot.lane.b32.xlu1 %v2629_v45, %s2397_s2  ;;  %v836_v11 = vrot.slane %v2629_v45, %v2493_v3  ;;  %v840_v12 = vrot.slane %v2632_v46, %v2493_v3 }
 0x162   :  { %3395 = vst [vmem:[#allocation8_spill] sm:$0xff] %v2638_v48  ;;  %v844_v13 = vrot.slane %v2635_v47, %v2493_v3  ;;  %v848_v14 = vrot.slane %v2638_v48, %v2493_v3  ;;  %v808_v15 = vrot.slane %v2629_v45, %v2490_v2  ;;  %v812_v28 = vrot.slane %v2632_v46, %v2490_v2 }
 0x163   :  { %v816_v29 = vrot.slane %v2635_v47, %v2490_v2  ;;  %v820_v34 = vrot.slane %v2638_v48, %v2490_v2  ;;  %v536_v36 = vrot.slane %v2742_v24, %v2493_v3  ;;  %v628_v37 = vrot.slane %v2747_v26, %v2490_v2 }
 0x165   :  { %515 = vrot.lane.b32.xlu0 %v2632_v46, %s2398_s20  ;;  %421 = vrot.lane.b32.xlu1 %v2638_v48, %s2397_s2  ;;  %v2682_v52 = vpop.permute.xlu1 %678 }
 0x169   :  { %609 = vrot.lane.b32.xlu0 %v2629_v45, %s2399_s21  ;;  %419 = vrot.lane.b32.xlu1 %v2635_v47, %s2397_s2 }
 0x16a   :  { %v2688_v6 = vpop.permute.xlu1 %746 }
 0x16d   :  { %615 = vrot.lane.b32.xlu0 %v2638_v48, %s2399_s21  ;;  %513 = vrot.lane.b32.xlu1 %v2629_v45, %s2398_s20 }
 0x16f   :  { %v2691_v53 = vpop.permute.xlu1 %774 }
 0x171   :  { %613 = vrot.lane.b32.xlu0 %v2635_v47, %s2399_s21  ;;  %519 = vrot.lane.b32.xlu1 %v2638_v48, %s2398_s20 }
 0x174   :  { %v803_v55 = vpop.permute.xlu1 %802 }
 0x175   :  { %705 = vrot.lane.b32.xlu0 %v2629_v45, %s2400_s22  ;;  %517 = vrot.lane.b32.xlu1 %v2635_v47, %s2398_s20  ;;  %v2805_v25 = vmul.f32 %v808_v15, %v803_v55  ;;  %v2807_v22 = vmul.f32 %v812_v28, %v803_v55  ;;  %v2811_v57 = vmul.f32 %v820_v34, %v803_v55  ;;  %v2825_v28 = vld [vmem:[%s3376_s8 + $0x6] ss:$8 sm:$0xf] }
 0x179   :  { %711 = vrot.lane.b32.xlu0 %v2638_v48, %s2400_s22  ;;  %611 = vrot.lane.b32.xlu1 %v2632_v46, %s2399_s21  ;;  %v2694_v56 = vpop.permute.xlu1 %898 }
 0x17d   :  { %709 = vrot.lane.b32.xlu0 %v2635_v47, %s2400_s22  ;;  %707 = vrot.lane.b32.xlu1 %v2632_v46, %s2400_s22 }
 0x17e   :  { %v2696_v58 = vpop.permute.xlu1 %994 }
 0x181   :  { %859 = vrot.lane.b32.xlu0 %v2632_v46, %s2401_s23  ;;  %857 = vrot.lane.b32.xlu1 %v2629_v45, %s2401_s23 }
 0x183   :  { %v2698_v59 = vpop.permute.xlu1 %1022 }
 0x185   :  { %953 = vrot.lane.b32.xlu0 %v2629_v45, %s2402_s24  ;;  %861 = vrot.lane.b32.xlu1 %v2635_v47, %s2401_s23 }
 0x188   :  { %v2702_v60 = vpop.permute.xlu1 %1090 }
 0x189   :  { %957 = vrot.lane.b32.xlu0 %v2635_v47, %s2402_s24  ;;  %863 = vrot.lane.b32.xlu1 %v2638_v48, %s2401_s23 }
 0x18d   :  { %959 = vrot.lane.b32.xlu0 %v2638_v48, %s2402_s24  ;;  %955 = vrot.lane.b32.xlu1 %v2632_v46, %s2402_s24  ;;  %v2706_v62 = vpop.permute.xlu1 %1118 }
 0x191   :  { %1049 = vrot.lane.b32.xlu0 %v2629_v45, %s2403_s25  ;;  %1051 = vrot.lane.b32.xlu1 %v2632_v46, %s2403_s25 }
 0x192   :  { %v2708_v7 = vpop.permute.xlu1 %1186 }
 0x195   :  { %1053 = vrot.lane.b32.xlu0 %v2635_v47, %s2403_s25  ;;  %1147 = vrot.lane.b32.xlu1 %v2632_v46, %s2404_s26 }
 0x199   :  { %1055 = vrot.lane.b32.xlu0 %v2638_v48, %s2403_s25  ;;  %1214 = vperm.xlu1 %2317, %v2575_v18   ;;  %v2700_v18 = vpop.permute.xlu0 %554  ;;  %s2405_s25 = smov 9  }
 0x19d   :  { %1145 = vrot.lane.b32.xlu0 %v2629_v45, %s2404_s26  ;;  %2319 = vset.pattern.permute.xlu1 %v3382_v54  ;;  %v2704_v61 = vpop.permute.xlu0 %582  ;;  %v2809_v54 = vmul.f32 %v816_v29, %v803_v55 }
 0x1a1   :  { %1149 = vrot.lane.b32.xlu0 %v2635_v47, %s2404_s26  ;;  %v831_v63 = vpop.permute.xlu0 %830 }
 0x1a2   :  { %v2749_v27 = vmul.f32 %v836_v11, %v831_v63  ;;  %v2757_v31 = vmul.f32 %v840_v12, %v831_v63  ;;  %v2759_v32 = vmul.f32 %v844_v13, %v831_v63  ;;  %v2761_v33 = vmul.f32 %v848_v14, %v831_v63  ;;  %v2797_v13 = vld [vmem:[%s3376_s8 + $0x5] ss:$8 sm:$0xf] }
 0x1a5   :  { %1151 = vrot.lane.b32.xlu0 %v2638_v48, %s2404_s26  ;;  %v2710_v8 = vpop.permute.xlu0 %926 }
 0x1d3   :  { %v416_v16 = vpop.permute.xlu1 %415  ;;  %v418_v17 = vpop.permute.xlu0 %417 }
 0x1d4   :  { %v428_v30 = vsel %vm425_vm3, %v416_v16, %v418_v17 }
 0x1d5   :  { %v453_v39 = vmul.f32 %v439_v0, %v428_v30 }
 0x1d7   :  { %v422_v40 = vpop.permute.xlu1 %421  ;;  %v2778_v41 = vpop.permute.xlu0 %515  ;;  %v468_v21 = vrot.slane %v453_v39, %v2490_v2  ;;  %v496_v55 = vrot.slane %v453_v39, %v2493_v3 }
 0x1d8   :  { %v429_v63 = vsel %vm425_vm3, %v422_v40, %v416_v16 }
 0x1d9   :  { %v452_v14 = vmul.f32 %v435_v19, %v429_v63 }
 0x1db   :  { %v420_v19 = vpop.permute.xlu1 %419  ;;  %v2814_v63 = vpop.permute.xlu0 %609  ;;  %v464_v16 = vrot.slane %v452_v14, %v2490_v2  ;;  %v492_v15 = vrot.slane %v452_v14, %v2493_v3 }
 0x1dc   :  { %v426_v29 = vsel %vm425_vm3, %v420_v19, %v422_v40  ;;  %v427_v34 = vsel %vm425_vm3, %v418_v17, %v420_v19  ;;  %v478_v19 = vmul.f32 %v468_v21, %v2667_v49  ;;  %v2859_v17 = vld [vmem:[%s3376_s8 + $0x7] ss:$8 sm:$0xf]  ;;  %vm1874_vm3 = vcmask 1044480  }
 0x1dd   :  { %v454_v30 = vmul.f32 %v443_v20, %v427_v34  ;;  %v455_v12 = vmul.f32 %v447_v23, %v426_v29  ;;  %v506_v34 = vmul.f32 %v496_v55, %v2672_v50  ;;  %v505_v11 = vmul.f32 %v492_v15, %v2672_v50 }
 0x1df   :  { %v472_v0 = vrot.slane %v454_v30, %v2490_v2  ;;  %v476_v14 = vrot.slane %v455_v12, %v2490_v2  ;;  %v500_v20 = vrot.slane %v454_v30, %v2493_v3  ;;  %v514_v23 = vpop.permute.xlu1 %513  ;;  %v616_v29 = vpop.permute.xlu0 %615  ;;  %v504_v39 = vrot.slane %v455_v12, %v2493_v3 }
 0x1e0   :  { %v524_v40 = vsel %vm521_vm4, %v514_v23, %v2778_v41  ;;  %v621_v21 = vsel %vm617_vm5, %v616_v29, %v2814_v63  ;;  %v477_v30 = vmul.f32 %v464_v16, %v2667_v49 }
 0x1e1   :  { %v479_v55 = vmul.f32 %v472_v0, %v2667_v49  ;;  %v550_v12 = vmul.f32 %v536_v36, %v524_v40  ;;  %v480_v10 = vmul.f32 %v476_v14, %v2667_v49  ;;  %v507_v44 = vmul.f32 %v500_v20, %v2672_v50 }
 0x1e2   :  { %v508_v43 = vmul.f32 %v504_v39, %v2672_v50  ;;  %v645_v42 = vmul.f32 %v628_v37, %v621_v21  ;;  %v510_v49 = vadd.f32 %v506_v34, %v478_v19  ;;  %v3396_v40 = vrot.slane %v2742_v24, %v2490_v2 }
 0x1e3   :  { %v564_v38 = vrot.slane %v550_v12, %v2490_v2  ;;  %v592_v1 = vrot.slane %v550_v12, %v2493_v3  ;;  %v520_v47 = vpop.permute.xlu1 %519  ;;  %v614_v45 = vpop.permute.xlu0 %613  ;;  %v509_v19 = vadd.f32 %v505_v11, %v477_v30  ;;  %v511_v34 = vadd.f32 %v507_v44, %v479_v55 }
 0x1e4   :  { %v656_v0 = vrot.slane %v645_v42, %v2490_v2  ;;  %v525_v50 = vsel %vm521_vm4, %v520_v47, %v514_v23  ;;  %v684_v39 = vrot.slane %v645_v42, %v2493_v3  ;;  %v618_v20 = vsel %vm617_vm5, %v614_v45, %v616_v29 }
 0x1e5   :  { %v574_v15 = vmul.f32 %v564_v38, %v2700_v18  ;;  %v549_v14 = vmul.f32 %v3396_v40, %v525_v50  ;;  %v512_v21 = vadd.f32 %v508_v43, %v480_v10  ;;  %v3397_v23 = vrot.slane %v2747_v26, %v2499_v5 }
 0x1e6   :  { %v602_v37 = vmul.f32 %v592_v1, %v2704_v61  ;;  %v669_v10 = vmul.f32 %v656_v0, %v2678_v51  ;;  %v697_v1 = vmul.f32 %v684_v39, %v2682_v52  ;;  %v3398_v30 = vrot.slane %v2742_v24, %v2496_v4 }
 0x1e7   :  { %v648_v12 = vmul.f32 %v3397_v23, %v618_v20  ;;  %v578_v36 = vadd.f32 %v574_v15, %v510_v49  ;;  %v560_v38 = vrot.slane %v549_v14, %v2490_v2  ;;  %v588_v42 = vrot.slane %v549_v14, %v2493_v3  ;;  %v518_v16 = vpop.permute.xlu1 %517  ;;  %v706_v48 = vpop.permute.xlu0 %705 }
 0x1e8   :  { %v522_v43 = vsel %vm521_vm4, %v518_v16, %v520_v47  ;;  %v523_v44 = vsel %vm521_vm4, %v2778_v41, %v518_v16  ;;  %v3399_v47 = vrot.slane %v2742_v24, %v2499_v5  ;;  %vm2411_vm4 = vmmov 0  }
 0x1e9   :  { %v668_v50 = vrot.slane %v648_v12, %v2490_v2  ;;  %v696_v29 = vrot.slane %v648_v12, %v2493_v3  ;;  %v573_v11 = vmul.f32 %v560_v38, %v2700_v18  ;;  %v551_v55 = vmul.f32 %v3398_v30, %v523_v44 }
 0x1ea   :  { %v606_v49 = vadd.f32 %v602_v37, %v578_v36  ;;  %v601_v15 = vmul.f32 %v588_v42, %v2704_v61  ;;  %v552_v14 = vmul.f32 %v3399_v47, %v522_v43 }
 0x1eb   :  { %v672_v40 = vmul.f32 %v668_v50, %v2678_v51  ;;  %v577_v41 = vadd.f32 %v573_v11, %v509_v19  ;;  %v700_v16 = vmul.f32 %v696_v29, %v2682_v52  ;;  %v568_v0 = vrot.slane %v551_v55, %v2490_v2  ;;  %v612_v20 = vpop.permute.xlu1 %611  ;;  %v712_v23 = vpop.permute.xlu0 %711 }
 0x1ec   :  { %v596_v39 = vrot.slane %v551_v55, %v2493_v3  ;;  %v572_v12 = vrot.slane %v552_v14, %v2490_v2  ;;  %v600_v36 = vrot.slane %v552_v14, %v2493_v3  ;;  %v619_v37 = vsel %vm617_vm5, %v612_v20, %v614_v45 }
 0x1ed   :  { %v620_v24 = vsel %vm617_vm5, %v2814_v63, %v612_v20  ;;  %v605_v19 = vadd.f32 %v601_v15, %v577_v41  ;;  %v575_v38 = vmul.f32 %v568_v0, %v2700_v18  ;;  %v3400_v50 = vrot.slane %v2747_v26, %v2493_v3 }
 0x1ee   :  { %v603_v42 = vmul.f32 %v596_v39, %v2704_v61  ;;  %v576_v43 = vmul.f32 %v572_v12, %v2700_v18  ;;  %v604_v44 = vmul.f32 %v600_v36, %v2704_v61  ;;  %v3401_v45 = vrot.slane %v2747_v26, %v2496_v4 }
 0x1ef   :  { %v646_v29 = vmul.f32 %v3400_v50, %v620_v24  ;;  %v717_v63 = vsel %vm713_vm6, %v712_v23, %v706_v48  ;;  %v673_v30 = vadd.f32 %v669_v10, %v605_v19  ;;  %v579_v55 = vadd.f32 %v575_v38, %v511_v34  ;;  %v708_v14 = vpop.permute.xlu1 %707  ;;  %v710_v41 = vpop.permute.xlu0 %709 }
 0x1f0   :  { %v647_v11 = vmul.f32 %v3401_v45, %v619_v37  ;;  %v580_v0 = vadd.f32 %v576_v43, %v512_v21  ;;  %v3402_v26 = vrot.slane %v2769_v35, %v2490_v2  ;;  %v716_v50 = vsel %vm713_vm6, %v706_v48, %v708_v14 }
 0x1f1   :  { %v660_v15 = vrot.slane %v646_v29, %v2490_v2  ;;  %v688_v47 = vrot.slane %v646_v29, %v2493_v3  ;;  %v607_v20 = vadd.f32 %v603_v42, %v579_v55  ;;  %v701_v10 = vadd.f32 %v697_v1, %v673_v30 }
 0x1f2   :  { %v664_v18 = vrot.slane %v647_v11, %v2490_v2  ;;  %v692_v61 = vrot.slane %v647_v11, %v2493_v3  ;;  %v741_v39 = vmul.f32 %v3402_v26, %v717_v63  ;;  %v608_v36 = vadd.f32 %v604_v44, %v580_v0 }
 0x1f3   :  { %v670_v12 = vmul.f32 %v660_v15, %v2678_v51  ;;  %v698_v34 = vmul.f32 %v688_v47, %v2682_v52  ;;  %v714_v42 = vsel %vm713_vm6, %v710_v41, %v712_v23  ;;  %v858_v29 = vpop.permute.xlu1 %857  ;;  %v860_v43 = vpop.permute.xlu0 %859  ;;  %v715_v63 = vsel %vm713_vm6, %v708_v14, %v710_v41 }
 0x1f4   :  { %v671_v37 = vmul.f32 %v664_v18, %v2678_v51  ;;  %v699_v24 = vmul.f32 %v692_v61, %v2682_v52  ;;  %v752_v21 = vrot.slane %v741_v39, %v2490_v2  ;;  %v780_v38 = vrot.slane %v741_v39, %v2493_v3 }
 0x1f5   :  { %v674_v19 = vadd.f32 %v670_v12, %v606_v49  ;;  %v676_v45 = vadd.f32 %v672_v40, %v608_v36  ;;  %v3403_v51 = vrot.slane %v2769_v35, %v2493_v3  ;;  %v3404_v48 = vrot.slane %v2769_v35, %v2499_v5 }
 0x1f6   :  { %v675_v1 = vadd.f32 %v671_v37, %v607_v20  ;;  %v765_v44 = vmul.f32 %v752_v21, %v2688_v6  ;;  %v793_v49 = vmul.f32 %v780_v38, %v2691_v53  ;;  %v3405_v0 = vrot.slane %v2769_v35, %v2496_v4 }
 0x1f7   :  { %v742_v52 = vmul.f32 %v3403_v51, %v716_v50  ;;  %v702_v11 = vadd.f32 %v698_v34, %v674_v19  ;;  %v744_v23 = vmul.f32 %v3404_v48, %v714_v42  ;;  %v704_v47 = vadd.f32 %v700_v16, %v676_v45  ;;  %v862_v41 = vpop.permute.xlu1 %861  ;;  %v2968_v26 = vpop.permute.xlu0 %953 }
 0x1f8   :  { %v703_v30 = vadd.f32 %v699_v24, %v675_v1  ;;  %v769_v55 = vadd.f32 %v765_v44, %v701_v10  ;;  %v743_v18 = vmul.f32 %v3405_v0, %v715_v63  ;;  %v868_v34 = vsel %vm865_vm7, %v858_v29, %v860_v43 }
 0x1f9   :  { %v756_v40 = vrot.slane %v742_v52, %v2490_v2  ;;  %v784_v15 = vrot.slane %v742_v52, %v2493_v3  ;;  %v764_v61 = vrot.slane %v744_v23, %v2490_v2  ;;  %v792_v14 = vrot.slane %v744_v23, %v2493_v3 }
 0x1fa   :  { %v797_v39 = vadd.f32 %v793_v49, %v769_v55  ;;  %v760_v16 = vrot.slane %v743_v18, %v2490_v2  ;;  %v788_v10 = vrot.slane %v743_v18, %v2493_v3  ;;  %v3406_v21 = vrot.slane %v2797_v13, %v2490_v2 }
 0x1fb   :  { %v766_v20 = vmul.f32 %v756_v40, %v2688_v6  ;;  %v794_v12 = vmul.f32 %v784_v15, %v2691_v53  ;;  %v768_v35 = vmul.f32 %v764_v61, %v2688_v6  ;;  %v796_v36 = vmul.f32 %v792_v14, %v2691_v53  ;;  %v864_v51 = vpop.permute.xlu1 %863  ;;  %v958_v52 = vpop.permute.xlu0 %957 }
 0x1fc   :  { %v825_v37 = vadd.f32 %v2805_v25, %v797_v39  ;;  %v893_v19 = vmul.f32 %v3406_v21, %v868_v34  ;;  %v867_v38 = vsel %vm865_vm7, %v860_v43, %v862_v41  ;;  %v767_v50 = vmul.f32 %v760_v16, %v2688_v6 }
 0x1fd   :  { %v770_v24 = vadd.f32 %v766_v20, %v702_v11  ;;  %v772_v42 = vadd.f32 %v768_v35, %v704_v47  ;;  %v795_v45 = vmul.f32 %v788_v10, %v2691_v53  ;;  %v3407_v1 = vrot.slane %v2797_v13, %v2493_v3 }
 0x1fe   :  { %v853_v11 = vadd.f32 %v2749_v27, %v825_v37  ;;  %v904_v49 = vrot.slane %v893_v19, %v2490_v2  ;;  %v932_v63 = vrot.slane %v893_v19, %v2493_v3  ;;  %v771_v48 = vadd.f32 %v767_v50, %v703_v30  ;;  %v3021_v37 = vld [vmem:[%s3376_s8 + $0x20] ss:$8 sm:$0xf] }
 0x1ff   :  { %v894_v44 = vmul.f32 %v3407_v1, %v867_v38  ;;  %v798_v25 = vadd.f32 %v794_v12, %v770_v24  ;;  %v800_v43 = vadd.f32 %v796_v36, %v772_v42  ;;  %v866_v15 = vsel %vm865_vm7, %v862_v41, %v864_v51  ;;  %v956_v18 = vpop.permute.xlu1 %955  ;;  %v960_v61 = vpop.permute.xlu0 %959 }
 0x200   :  { %v917_v55 = vmul.f32 %v904_v49, %v2694_v56  ;;  %v945_v40 = vmul.f32 %v932_v63, %v2710_v8  ;;  %v799_v27 = vadd.f32 %v795_v45, %v771_v48  ;;  %v3408_v20 = vrot.slane %v2797_v13, %v2496_v4 }
 0x201   :  { %v908_v6 = vrot.slane %v894_v44, %v2490_v2  ;;  %v936_v23 = vrot.slane %v894_v44, %v2493_v3  ;;  %v826_v53 = vadd.f32 %v2807_v22, %v798_v25  ;;  %v828_v47 = vadd.f32 %v2811_v57, %v800_v43 }
 0x202   :  { %v921_v14 = vadd.f32 %v917_v55, %v853_v11  ;;  %v869_v22 = vsel %vm865_vm7, %v864_v51, %v858_v29  ;;  %v895_v12 = vmul.f32 %v3408_v20, %v866_v15  ;;  %v827_v57 = vadd.f32 %v2809_v54, %v799_v27 }
 0x203   :  { %v918_v0 = vmul.f32 %v908_v6, %v2694_v56  ;;  %v946_v30 = vmul.f32 %v936_v23, %v2710_v8  ;;  %v854_v39 = vadd.f32 %v2757_v31, %v826_v53  ;;  %v856_v41 = vadd.f32 %v2761_v33, %v828_v47  ;;  %v1050_v21 = vpop.permute.xlu0 %1049  ;;  %v1052_v47 = vpop.permute.xlu1 %1051 }
 0x204   :  { %v3409_v34 = vrot.slane %v2797_v13, %v2499_v5  ;;  %v963_v31 = vsel %vm961_vm8, %v956_v18, %v958_v52  ;;  %v949_v35 = vadd.f32 %v945_v40, %v921_v14  ;;  %v912_v29 = vrot.slane %v895_v12, %v2490_v2 }
 0x205   :  { %v922_v10 = vadd.f32 %v918_v0, %v854_v39  ;;  %v940_v36 = vrot.slane %v895_v12, %v2493_v3  ;;  %v855_v54 = vadd.f32 %v2759_v32, %v827_v57  ;;  %v964_v24 = vsel %vm961_vm8, %v2968_v26, %v956_v18 }
 0x206   :  { %v896_v16 = vmul.f32 %v3409_v34, %v869_v22  ;;  %v919_v38 = vmul.f32 %v912_v29, %v2694_v56  ;;  %v3410_v50 = vrot.slane %v2825_v28, %v2490_v2  ;;  %v1080_v45 = vrot.slane %v2859_v17, %v2499_v5 }
 0x207   :  { %v950_v19 = vadd.f32 %v946_v30, %v922_v10  ;;  %v3411_v1 = vrot.slane %v2825_v28, %v2493_v3  ;;  %v962_v51 = vsel %vm961_vm8, %v958_v52, %v960_v61  ;;  %v1164_v25 = vrot.slane %v3021_v37, %v2490_v2  ;;  %v1054_v53 = vpop.permute.xlu0 %1053 }
 0x208   :  { %v916_v33 = vrot.slane %v896_v16, %v2490_v2  ;;  %v944_v13 = vrot.slane %v896_v16, %v2493_v3  ;;  %v989_v42 = vmul.f32 %v3410_v50, %v964_v24  ;;  %v923_v11 = vadd.f32 %v919_v38, %v855_v54 }
 0x209   :  { %v990_v44 = vmul.f32 %v3411_v1, %v963_v31  ;;  %v947_v49 = vmul.f32 %v940_v36, %v2710_v8  ;;  %v965_v48 = vsel %vm961_vm8, %v960_v61, %v2968_v26  ;;  %v3412_v52 = vrot.slane %v2825_v28, %v2496_v4 }
 0x20a   :  { %v920_v32 = vmul.f32 %v916_v33, %v2694_v56  ;;  %v1000_v63 = vrot.slane %v989_v42, %v2490_v2  ;;  %v948_v43 = vmul.f32 %v944_v13, %v2710_v8  ;;  %v1028_v15 = vrot.slane %v989_v42, %v2493_v3 }
 0x20b   :  { %v1004_v6 = vrot.slane %v990_v44, %v2490_v2  ;;  %v991_v23 = vmul.f32 %v3412_v52, %v962_v51  ;;  %v951_v55 = vadd.f32 %v947_v49, %v923_v11  ;;  %v3413_v26 = vrot.slane %v2825_v28, %v2499_v5 }
 0x20c   :  { %v924_v56 = vadd.f32 %v920_v32, %v856_v41  ;;  %v1013_v40 = vmul.f32 %v1000_v63, %v2696_v58  ;;  %v1032_v30 = vrot.slane %v990_v44, %v2493_v3  ;;  %v1168_v22 = vrot.slane %v3021_v37, %v2493_v3  ;;  %v1056_v41 = vpop.permute.xlu0 %1055 }
 0x20d   :  { %v992_v27 = vmul.f32 %v3413_v26, %v965_v48  ;;  %v1014_v8 = vmul.f32 %v1004_v6, %v2696_v58  ;;  %v1008_v18 = vrot.slane %v991_v23, %v2490_v2  ;;  %v1036_v39 = vrot.slane %v991_v23, %v2493_v3 }
 0x20e   :  { %v952_v0 = vadd.f32 %v948_v43, %v924_v56  ;;  %v1017_v61 = vadd.f32 %v1013_v40, %v949_v35  ;;  %v1060_v12 = vsel %vm1057_vm9, %v1050_v21, %v1052_v47  ;;  %v1059_v57 = vsel %vm1057_vm9, %v1052_v47, %v1054_v53 }
 0x20f   :  { %v1012_v14 = vrot.slane %v992_v27, %v2490_v2  ;;  %v1015_v20 = vmul.f32 %v1008_v18, %v2696_v58  ;;  %v1040_v28 = vrot.slane %v992_v27, %v2493_v3  ;;  %v1018_v34 = vadd.f32 %v1014_v8, %v950_v19 }
 0x210   :  { %v1041_v16 = vmul.f32 %v1028_v15, %v2698_v59  ;;  %v1172_v35 = vrot.slane %v3021_v37, %v2496_v4  ;;  %v1042_v10 = vmul.f32 %v1032_v30, %v2698_v59  ;;  %v3414_v29 = vrot.slane %v2859_v17, %v2490_v2  ;;  %v1146_v44 = vpop.permute.xlu0 %1145 }
 0x211   :  { %v1016_v31 = vmul.f32 %v1012_v14, %v2696_v58  ;;  %v3415_v54 = vrot.slane %v2859_v17, %v2493_v3  ;;  %v1176_v13 = vrot.slane %v3021_v37, %v2499_v5  ;;  %v1019_v19 = vadd.f32 %v1015_v20, %v951_v55  ;;  %v1148_v37 = vpop.permute.xlu1 %1147 }
 0x212   :  { %v1085_v36 = vmul.f32 %v3414_v29, %v1060_v12  ;;  %v1045_v24 = vadd.f32 %v1041_v16, %v1017_v61  ;;  %v1058_v58 = vsel %vm1057_vm9, %v1054_v53, %v1056_v41  ;;  %v1061_v38 = vsel %vm1057_vm9, %v1056_v41, %v1050_v21 }
 0x213   :  { %v1086_v33 = vmul.f32 %v3415_v54, %v1059_v57  ;;  %v1043_v50 = vmul.f32 %v1036_v39, %v2698_v59  ;;  %v1044_v42 = vmul.f32 %v1040_v28, %v2698_v59  ;;  %v1046_v51 = vadd.f32 %v1042_v10, %v1018_v34 }
 0x214   :  { %v1096_v32 = vrot.slane %v1085_v36, %v2490_v2  ;;  %v1020_v11 = vadd.f32 %v1016_v31, %v952_v0  ;;  %v3416_v49 = vrot.slane %v2859_v17, %v2496_v4  ;;  %v1088_v48 = vmul.f32 %v1080_v45, %v1061_v38  ;;  %v1150_v15 = vpop.permute.xlu0 %1149 }
 0x215   :  { %v1100_v1 = vrot.slane %v1086_v33, %v2490_v2  ;;  %v1124_v21 = vrot.slane %v1085_v36, %v2493_v3  ;;  %v1156_v59 = vsel %vm1153_vm10, %v1146_v44, %v1148_v37  ;;  %v1047_v6 = vadd.f32 %v1043_v50, %v1019_v19 }
 0x216   :  { %v1087_v63 = vmul.f32 %v3416_v49, %v1058_v58  ;;  %v1109_v56 = vmul.f32 %v1096_v32, %v2702_v60  ;;  %v1108_v23 = vrot.slane %v1088_v48, %v2490_v2  ;;  %v1128_v17 = vrot.slane %v1086_v33, %v2493_v3 }
 0x217   :  { %v1110_v43 = vmul.f32 %v1100_v1, %v2702_v60  ;;  %v1136_v45 = vrot.slane %v1088_v48, %v2493_v3  ;;  %v1181_v40 = vmul.f32 %v1164_v25, %v1156_v59  ;;  %v1048_v26 = vadd.f32 %v1044_v42, %v1020_v11 }
 0x218   :  { %v1104_v52 = vrot.slane %v1087_v63, %v2490_v2  ;;  %v1132_v53 = vrot.slane %v1087_v63, %v2493_v3  ;;  %v1113_v55 = vadd.f32 %v1109_v56, %v1045_v24  ;;  %v1112_v47 = vmul.f32 %v1108_v23, %v2702_v60  ;;  %v1152_v41 = vpop.permute.xlu0 %1151  ;;  %v1215_v29 = vpop.permute.xlu1 %1214 }
 0x219   :  { %v1155_v0 = vsel %vm1153_vm10, %v1148_v37, %v1150_v15  ;;  %v1137_v8 = vmul.f32 %v1124_v21, %v2706_v62  ;;  %v1114_v30 = vadd.f32 %v1110_v43, %v1046_v51  ;;  %v1192_v61 = vrot.slane %v1181_v40, %v2490_v2 }
 0x21a   :  { %v1111_v27 = vmul.f32 %v1104_v52, %v2702_v60  ;;  %v1139_v18 = vmul.f32 %v1132_v53, %v2706_v62  ;;  %v1116_v39 = vadd.f32 %v1112_v47, %v1048_v26  ;;  %v1140_v25 = vmul.f32 %v1136_v45, %v2706_v62 }
 0x21b   :  { %v1182_v20 = vmul.f32 %v1168_v22, %v1155_v0  ;;  %v1141_v28 = vadd.f32 %v1137_v8, %v1113_v55  ;;  %v1138_v12 = vmul.f32 %v1128_v17, %v2706_v62  ;;  %v1205_v60 = vmul.f32 %v1192_v61, %v2708_v7 }
 0x21c   :  { %v1115_v14 = vadd.f32 %v1111_v27, %v1047_v6  ;;  %v1220_v57 = vrot.slane %v1181_v40, %v2493_v3  ;;  %v1144_v16 = vadd.f32 %v1140_v25, %v1116_v39  ;;  %v1154_v54 = vsel %vm1153_vm10, %v1150_v15, %v1152_v41  ;;  %v1344_v39 = vld [vmem:[#allocation2 + $0x88] sm:$0xff]  ;;  %v1375_v25 = vld [vmem:[#allocation2 + $0x180] sm:$0xff] }
 0x21d   :  { %v1196_v31 = vrot.slane %v1182_v20, %v2490_v2  ;;  %v1224_v10 = vrot.slane %v1182_v20, %v2493_v3  ;;  %v1209_v36 = vadd.f32 %v1205_v60, %v1141_v28  ;;  %v1157_v22 = vsel %vm1153_vm10, %v1152_v41, %v1146_v44  ;;  %v1376_v28 = vld [vmem:[#allocation2 + $0x188] sm:$0xff] }
 0x21e   :  { %v1143_v34 = vadd.f32 %v1139_v18, %v1115_v14  ;;  %v1233_v62 = vmul.f32 %v1220_v57, %v1215_v29  ;;  %v1142_v33 = vadd.f32 %v1138_v12, %v1114_v30  ;;  %v1183_v19 = vmul.f32 %v1172_v35, %v1154_v54  ;;  %v3161_v30 = vld [vmem:[%s3369_s1 + $0x2] sm:$0xf]  ;;  %v1328_v60 = vld [vmem:[#allocation2 + $0x8] sm:$0xff]  ;;  %v1378_v54 = vld [vmem:[#allocation2 + $0x198] sm:$0xff] }
 0x21f   :  { %v1206_v24 = vmul.f32 %v1196_v31, %v2708_v7  ;;  %v1184_v58 = vmul.f32 %v1176_v13, %v1157_v22  ;;  %v1234_v38 = vmul.f32 %v1224_v10, %v1215_v29  ;;  %v3417_v18 = vmov 2   ;;  %v1343_v14 = vld [vmem:[#allocation2 + $0x80] sm:$0xff]  ;;  %v1345_v31 = vld [vmem:[#allocation2 + $0x90] sm:$0xff] }
 0x220   :  { %v3124_v50 = vadd.f32 %v1233_v62, %v1209_v36  ;;  %v1200_v32 = vrot.slane %v1183_v19, %v2490_v2  ;;  %v1228_v51 = vrot.slane %v1183_v19, %v2493_v3  ;;  %v3418_v61 = vmov 0   ;;  %v1327_v12 = vld [vmem:[#allocation2] sm:$0xff]  ;;  %v1377_v36 = vld [vmem:[#allocation2 + $0x190] sm:$0xff] }
 0x221   :  { %v1210_v42 = vadd.f32 %v1206_v24, %v1142_v33  ;;  %v1204_v1 = vrot.slane %v1184_v58, %v2490_v2  ;;  %v1232_v11 = vrot.slane %v1184_v58, %v2493_v3  ;;  %v2170_v20 = vpack.c.bf16 %v1344_v39, %v1343_v14  ;;  %v1329_v33 = vld [vmem:[#allocation2 + $0x10] sm:$0xff]  ;;  %v1330_v24 = vld [vmem:[#allocation2 + $0x18] sm:$0xff]  ;;  %v1335_v39 = vld [vmem:[#allocation2 + $0x40] sm:$0xff] }
 0x222   :  { %v1207_v9 = vmul.f32 %v1200_v32, %v2708_v7  ;;  %v1235_v35 = vmul.f32 %v1228_v51, %v1215_v29  ;;  %v1252_v49 = vmul.f32 %v3124_v50, %v3124_v50  ;;  %v2202_v57 = vpack.c.bf16 %v1376_v28, %v1375_v25  ;;  %v1361_v19 = vld [vmem:[#allocation2 + $0x110] sm:$0xff]  ;;  %v1348_v32 = vld [vmem:[#allocation2 + $0xa8] sm:$0xff] }
 0x223   :  { %v1208_v44 = vmul.f32 %v1204_v1, %v2708_v7  ;;  %v3132_v37 = vadd.f32 %v1234_v38, %v1210_v42  ;;  %v1236_v13 = vmul.f32 %v1232_v11, %v1215_v29  ;;  %v1242_v7 = vsel %vm1241_vm11, %v3124_v50, 0.0  ;;  %2171 = vmatprep.subr.bf16.mxu0 %v2170_v20  ;;  %v1346_v29 = vld [vmem:[#allocation2 + $0x98] sm:$0xff]  ;;  %v1347_v42 = vld [vmem:[#allocation2 + $0xa0] sm:$0xff]  ;;  %v1336_v25 = vld [vmem:[#allocation2 + $0x48] sm:$0xff] }
 0x224   :  { %v1211_v63 = vadd.f32 %v1207_v9, %v1143_v34  ;;  %v1256_v17 = vsel %vm1241_vm11, %v1252_v49, 0.0  ;;  %v2172_v41 = vpack.c.bf16 %v1328_v60, %v1327_v12  ;;  %v1359_v34 = vld [vmem:[#allocation2 + $0x100] sm:$0xff]  ;;  %2203 = vmatprep.subr.bf16.mxu1 %v2202_v57  ;;  %v2174_v22 = vpack.c.bf16 %v1346_v29, %v1345_v31  ;;  %v1362_v38 = vld [vmem:[#allocation2 + $0x118] sm:$0xff]  ;;  %v1380_v9 = vld [vmem:[#allocation2 + $0x1a8] sm:$0xff] }
 0x225   :  { %v1212_v48 = vadd.f32 %v1208_v44, %v1144_v16  ;;  %v1243_v56 = vsel %vm1241_vm11, %v3132_v37, 0.0  ;;  %v1253_v21 = vmul.f32 %v3132_v37, %v3132_v37  ;;  %v1360_v16 = vld [vmem:[#allocation2 + $0x108] sm:$0xff]  ;;  %v2206_v62 = vpack.c.bf16 %v1378_v54, %v1377_v36  ;;  %v1379_v11 = vld [vmem:[#allocation2 + $0x1a0] sm:$0xff]  ;;  %v1353_v60 = vld [vmem:[#allocation2 + $0xd0] sm:$0xff] }
 0x226   :  { %v3140_v43 = vadd.f32 %v1235_v35, %v1211_v63  ;;  %v1244_v52 = vadd.f32 %v1243_v56, %v1242_v7  ;;  %v2204_v10 = vpack.c.bf16 %v1360_v16, %v1359_v34  ;;  %2173 = vmatpush3.bf16.msra.mxu0 %v2172_v41  ;;  %v2176_v58 = vpack.c.bf16 %v1330_v24, %v1329_v33  ;;  %v1331_v44 = vld [vmem:[#allocation2 + $0x20] sm:$0xff]  ;;  %v1364_v63 = vld [vmem:[#allocation2 + $0x128] sm:$0xff]  ;;  %v1349_v56 = vld [vmem:[#allocation2 + $0xb0] sm:$0xff] }
 0x227   :  { %v3142_v59 = vadd.f32 %v1236_v13, %v1212_v48  ;;  %v1257_v6 = vsel %vm1241_vm11, %v1253_v21, 0.0  ;;  %2175 = vmatprep.subr.bf16.mxu0 %v2174_v22  ;;  %v2208_v1 = vpack.c.bf16 %v1362_v38, %v1361_v19  ;;  %v2178_v51 = vpack.c.bf16 %v1348_v32, %v1347_v42  ;;  %v1332_v13 = vld [vmem:[#allocation2 + $0x28] sm:$0xff]  ;;  %v1363_v49 = vld [vmem:[#allocation2 + $0x120] sm:$0xff]  ;;  %v1350_v21 = vld [vmem:[#allocation2 + $0xb8] sm:$0xff] }
 0x228   :  { %v1245_v23 = vsel %vm1241_vm11, %v3140_v43, 0.0  ;;  %v1254_v53 = vmul.f32 %v3140_v43, %v3140_v43  ;;  %v1258_v40 = vadd.f32 %v1257_v6, %v1256_v17  ;;  %2205 = vmatpush3.bf16.msra.mxu1 %v2204_v10  ;;  %v2210_v35 = vpack.c.bf16 %v1380_v9, %v1379_v11  ;;  %v1381_v7 = vld [vmem:[#allocation2 + $0x1b0] sm:$0xff]  ;;  %v1367_v20 = vld [vmem:[#allocation2 + $0x140] sm:$0xff]  ;;  %v1368_v12 = vld [vmem:[#allocation2 + $0x148] sm:$0xff] }
 0x229   :  { %v1255_v55 = vmul.f32 %v3142_v59, %v3142_v59  ;;  %v1246_v45 = vadd.f32 %v1245_v23, %v1244_v52  ;;  %v1247_v15 = vsel %vm1241_vm11, %v3142_v59, 0.0  ;;  %2207 = vmatprep.subr.bf16.mxu1 %v2206_v62  ;;  %v2180_v48 = vpack.c.bf16 %v1332_v13, %v1331_v44  ;;  %v1382_v23 = vld [vmem:[#allocation2 + $0x1b8] sm:$0xff]  ;;  %v1385_v41 = vld [vmem:[#allocation2 + $0x1d0] sm:$0xff]  ;;  %v1355_v9 = vld [vmem:[#allocation2 + $0xe0] sm:$0xff] }
 0x22a   :  { %v1259_v26 = vsel %vm1241_vm11, %v1254_v53, 0.0  ;;  %2177 = vmatpush3.bf16.msra.mxu0 %v2176_v58  ;;  %v2212_v6 = vpack.c.bf16 %v1364_v63, %v1363_v49  ;;  %v2182_v52 = vpack.c.bf16 %v1350_v21, %v1349_v56  ;;  %v1333_v53 = vld [vmem:[#allocation2 + $0x30] sm:$0xff]  ;;  %v2214_v17 = vpack.c.bf16 %v1382_v23, %v1381_v7  ;;  %v1354_v57 = vld [vmem:[#allocation2 + $0xd8] sm:$0xff]  ;;  %v1356_v44 = vld [vmem:[#allocation2 + $0xe8] sm:$0xff] }
 0x22b   :  { %v1248_v27 = vadd.f32 %v1247_v15, %v1246_v45  ;;  %v1260_v47 = vadd.f32 %v1259_v26, %v1258_v40  ;;  %v1261_v0 = vsel %vm1241_vm11, %v1255_v55, 0.0  ;;  %2179 = vmatprep.subr.bf16.mxu0 %v2178_v51  ;;  %v1334_v55 = vld [vmem:[#allocation2 + $0x38] sm:$0xff]  ;;  %v1365_v45 = vld [vmem:[#allocation2 + $0x130] sm:$0xff]  ;;  %v1351_v15 = vld [vmem:[#allocation2 + $0xc0] sm:$0xff]  ;;  %v2188_v16 = vpack.c.bf16 %v1336_v25, %v1335_v39 }
 0x22c   :  { %2209 = vmatpush3.bf16.msra.mxu1 %v2208_v1  ;;  %v1366_v40 = vld [vmem:[#allocation2 + $0x138] sm:$0xff]  ;;  %v1352_v26 = vld [vmem:[#allocation2 + $0xc8] sm:$0xff]  ;;  %v2220_v31 = vpack.c.bf16 %v1368_v12, %v1367_v20  ;;  %v2190_v10 = vpack.c.bf16 %v1354_v57, %v1353_v60  ;;  %v1337_v42 = vld [vmem:[#allocation2 + $0x50] sm:$0xff]  ;;  %v2194_v13 = vpack.c.bf16 %v1356_v44, %v1355_v9  ;;  %v3419_v39 = vmov 1  }
 0x22d   :  { %1249 = vadd.xlane.f32.xlu1 %v1248_v27  ;;  %v1262_v8 = vadd.f32 %v1261_v0, %v1260_v47  ;;  %2211 = vmatprep.subr.bf16.mxu1 %v2210_v35  ;;  %v1383_v27 = vld [vmem:[#allocation2 + $0x1c0] sm:$0xff]  ;;  %v1384_v47 = vld [vmem:[#allocation2 + $0x1c8] sm:$0xff]  ;;  %v2184_v0 = vpack.c.bf16 %v1334_v55, %v1333_v53  ;;  %v2186_v14 = vpack.c.bf16 %v1352_v26, %v1351_v15  ;;  %v1386_v34 = vld [vmem:[#allocation2 + $0x1d8] sm:$0xff]  ;;  %v3420_v25 = vmov 3  }
 0x22e   :  { %2181 = vmatpush3.bf16.msra.mxu0 %v2180_v48  ;;  %v2218_v28 = vpack.c.bf16 %v1384_v47, %v1383_v27  ;;  %v2222_v29 = vpack.c.bf16 %v1386_v34, %v1385_v41  ;;  %v1338_v32 = vld [vmem:[#allocation2 + $0x58] sm:$0xff]  ;;  %v1369_v1 = vld [vmem:[#allocation2 + $0x150] sm:$0xff]  ;;  %v1387_v49 = vld [vmem:[#allocation2 + $0x1e0] sm:$0xff]  ;;  %v3421_v20 = vmov 4   ;;  %vm2006_vm7 = vcmask 9216  }
 0x22f   :  { %1263 = vadd.xlane.f32.xlu0 %v1262_v8  ;;  %2183 = vmatprep.subr.bf16.mxu0 %v2182_v52  ;;  %v2216_v8 = vpack.c.bf16 %v1366_v40, %v1365_v45  ;;  %v2192_v51 = vpack.c.bf16 %v1338_v32, %v1337_v42  ;;  %v1370_v11 = vld [vmem:[#allocation2 + $0x158] sm:$0xff]  ;;  %v1388_v63 = vld [vmem:[#allocation2 + $0x1e8] sm:$0xff]  ;;  %v1339_v48 = vld [vmem:[#allocation2 + $0x60] sm:$0xff] }
 0x230   :  { %2213 = vmatpush3.bf16.msra.mxu1 %v2212_v6  ;;  %v2224_v35 = vpack.c.bf16 %v1370_v11, %v1369_v1  ;;  %v2226_v56 = vpack.c.bf16 %v1388_v63, %v1387_v49  ;;  %v1340_v21 = vld [vmem:[#allocation2 + $0x68] sm:$0xff]  ;;  %v1371_v7 = vld [vmem:[#allocation2 + $0x160] sm:$0xff]  ;;  %v1357_v23 = vld [vmem:[#allocation2 + $0xf0] sm:$0xff] }
 0x231   :  { %2215 = vmatprep.subr.bf16.mxu1 %v2214_v17  ;;  %v1372_v6 = vld [vmem:[#allocation2 + $0x168] sm:$0xff]  ;;  %v1358_v53 = vld [vmem:[#allocation2 + $0xf8] sm:$0xff]  ;;  %v1389_v55 = vld [vmem:[#allocation2 + $0x1f0] sm:$0xff] }
 0x232   :  { %2185 = vmatpush3.bf16.msra.mxu0 %v2184_v0  ;;  %v2228_v52 = vpack.c.bf16 %v1372_v6, %v1371_v7  ;;  %v2198_v17 = vpack.c.bf16 %v1358_v53, %v1357_v23  ;;  %v1390_v45 = vld [vmem:[#allocation2 + $0x1f8] sm:$0xff]  ;;  %v1341_v40 = vld [vmem:[#allocation2 + $0x70] sm:$0xff] }
 0x233   :  { %2187 = vmatprep.subr.bf16.mxu0 %v2186_v14  ;;  %v1342_v15 = vld [vmem:[#allocation2 + $0x78] sm:$0xff]  ;;  %v2230_v26 = vpack.c.bf16 %v1390_v45, %v1389_v55  ;;  %v1373_v27 = vld [vmem:[#allocation2 + $0x170] sm:$0xff]  ;;  %v1535_v14 = vld [vmem:[%s3371_s3] sm:$0xf] }
 0x234   :  { %2217 = vmatpush3.bf16.msra.mxu1 %v2216_v8  ;;  %v1374_v47 = vld [vmem:[#allocation2 + $0x178] sm:$0xff]  ;;  %v2200_v0 = vpack.c.bf16 %v1342_v15, %v1341_v40  ;;  %v3424_v63 = vld [vmem:[#allocation7_spill] sm:$0xff] }
 0x235   :  { %2219 = vmatprep.subr.bf16.mxu1 %v2218_v28  ;;  %v2232_v8 = vpack.c.bf16 %v1374_v47, %v1373_v27  ;;  %v1587_v28 = vld [vmem:[%s3372_s4] sm:$0xf]  ;;  %v3422_v44 = vld [vmem:[#allocation8_spill] sm:$0xff] }
 0x236   :  { %2189 = vmatpush3.bf16.msra.mxu0 %v2188_v16  ;;  %v3425_v47 = vld [vmem:[#allocation5_spill] sm:$0xff] }
 0x237   :  { %2191 = vmatprep.subr.bf16.mxu0 %v2190_v10 }
 0x238   :  { %2221 = vmatpush3.bf16.msra.mxu1 %v2220_v31 }
 0x239   :  { %2223 = vmatprep.subr.bf16.mxu1 %v2222_v29 }
 0x23a   :  { %2193 = vmatpush3.bf16.msra.mxu0 %v2192_v51 }
 0x23b   :  { %2195 = vmatprep.subr.bf16.mxu0 %v2194_v13  ;;  %v3423_v13 = vld [vmem:[#allocation6_spill] sm:$0xff] }
 0x23c   :  { %2225 = vmatpush3.bf16.msra.mxu1 %v2224_v35 }
 0x23d   :  { %2227 = vmatprep.subr.bf16.mxu1 %v2226_v56 }
 0x23e   :  { %1287 = vperm.xlu1 %2319, %v3161_v30  }
 0x240   :  { %2229 = vmatpush3.bf16.msra.mxu1 %v2228_v52 }
 0x241   :  { %2231 = vmatprep.subr.bf16.mxu1 %v2230_v26 }
 0x242   :  { %2320 = vset.pattern.permute.xlu1 %v3417_v18 }
 0x243   :  { %1299 = vperm.xlu1 %2320, %v3161_v30  }
 0x244   :  { %2233 = vmatpush3.bf16.msra.mxu1 %v2232_v8 }
 0x247   :  { %2321 = vset.pattern.permute.xlu1 %v3418_v61 }
 0x248   :  { %1538 = vperm.xlu1 %2321, %v1535_v14  }
 0x24c   :  { %2322 = vset.pattern.permute.xlu1 %v3419_v39 }
 0x24d   :  { %1548 = vperm.xlu1 %2322, %v1535_v14  }
 0x251   :  { %2323 = vset.pattern.permute.xlu1 %v3417_v18 }
 0x252   :  { %1558 = vperm.xlu1 %2323, %v1535_v14  }
 0x256   :  { %2324 = vset.pattern.permute.xlu1 %v3420_v25 }
 0x257   :  { %1568 = vperm.xlu1 %2324, %v1535_v14  }
 0x25b   :  { %2325 = vset.pattern.permute.xlu1 %v3421_v20 }
 0x25c   :  { %1578 = vperm.xlu1 %2325, %v1535_v14  }
 0x260   :  { %2326 = vset.pattern.permute.xlu1 %v3418_v61 }
 0x261   :  { %1590 = vperm.xlu1 %2326, %v1587_v28  }
 0x265   :  { %2327 = vset.pattern.permute.xlu1 %v3419_v39 }
 0x2ba   :  { %v1250_v36 = vpop.xlane.xlu1 %1249 }
 0x2bb   :  { %v3167_v54 = vmul.f32 0.001953125, %v1250_v36 }
 0x2bc   :  { %v1264_v22 = vpop.xlane.xlu0 %1263 }
 0x2bd   :  { %v1265_v62 = vmul.f32 0.001953125, %v1264_v22  ;;  %v1266_v33 = vmul.f32 %v3167_v54, %v3167_v54  ;;  %v1269_v60 = vsub.f32 %v3124_v50, %v3167_v54  ;;  %v1270_v57 = vsub.f32 %v3132_v37, %v3167_v54 }
 0x2be   :  { %v1288_v12 = vpop.permute.xlu1 %1287  ;;  %v1271_v41 = vsub.f32 %v3140_v43, %v3167_v54  ;;  %v1272_v34 = vsub.f32 %v3142_v59, %v3167_v54 }
 0x2bf   :  { %v1267_v24 = vsub.f32 %v1265_v62, %v1266_v33 }
 0x2c1   :  { %v1273_v19 = vadd.f32 1e-05, %v1267_v24 }
 0x2c2   :  { %v1300_v22 = vpop.permute.xlu1 %1299 }
 0x2c3   :  { %2339 = vrsqrt.f32 %v1273_v19 }
 0x2c7   :  { %v1539_v56 = vpop.permute.xlu1 %1538 }
 0x2cd   :  { %v2340_v58 = vpop.eup %2339 }
 0x2ce   :  { %v1275_v38 = vmul.f32 %v2340_v58, %v3161_v30  ;;  %v2196_v30 = vpack.c.bf16 %v1340_v21, %v1339_v48  ;;  %v1549_v21 = vpop.permute.xlu1 %1548 }
 0x2d0   :  { %1278 = vperm.xlu0 %2318, %v1275_v38   ;;  %2197 = vmatpush3.bf16.msra.mxu0 %v2196_v30 }
 0x2d1   :  { %2199 = vmatprep.subr.bf16.mxu0 %v2198_v17 }
 0x2d2   :  { %v1559_v7 = vpop.permute.xlu1 %1558 }
 0x2d4   :  { %2201 = vmatpush3.bf16.msra.mxu0 %v2200_v0  ;;  %v1583_v0 = vsub.s32 4, %v3425_v47 }
 0x2d6   :  { %v1569_v55 = vpop.permute.xlu1 %1568 }
 0x2db   :  { %v1579_v8 = vpop.permute.xlu1 %1578 }
 0x34f   :  { %v1279_v16 = vpop.permute.xlu0 %1278 }
 0x350   :  { %v1281_v31 = vmul.f32 %v1279_v16, %v1269_v60  ;;  %v1282_v10 = vmul.f32 %v1279_v16, %v1270_v57  ;;  %v1283_v29 = vmul.f32 %v1279_v16, %v1271_v41  ;;  %v1284_v36 = vmul.f32 %v1279_v16, %v1272_v34 }
 0x352   :  { %v1290_v62 = vadd.f32 %v1288_v12, %v1281_v31  ;;  %v1291_v33 = vadd.f32 %v1288_v12, %v1282_v10  ;;  %v1292_v24 = vadd.f32 %v1288_v12, %v1283_v29  ;;  %v1293_v19 = vadd.f32 %v1288_v12, %v1284_v36 }
 0x354   :  { %v1302_v50 = vmul.f32 %v1300_v22, %v1290_v62  ;;  %v1303_v58 = vmul.f32 %v1300_v22, %v1291_v33  ;;  %v1304_v37 = vmul.f32 %v1300_v22, %v1292_v24  ;;  %v1305_v38 = vmul.f32 %v1300_v22, %v1293_v19 }
 0x355   :  { %vm1295_vm13 = vcmp.gt.f32.partialorder %v1291_v33, 0.0  ;;  %vm1297_vm14 = vcmp.gt.f32.partialorder %v1293_v19, 0.0  ;;  %vm1294_vm15 = vcmp.gt.f32.partialorder %v1290_v62, 0.0  ;;  %vm1296_vm1 = vcmp.gt.f32.partialorder %v1292_v24, 0.0 }
 0x356   :  { %v1307_v43 = vsel %vm1295_vm13, %v1291_v33, %v1303_v58  ;;  %v1309_v59 = vsel %vm1297_vm14, %v1293_v19, %v1305_v38  ;;  %v1306_v54 = vsel %vm1294_vm15, %v1290_v62, %v1302_v50  ;;  %v1308_v42 = vsel %vm1296_vm1, %v1292_v24, %v1304_v37  ;;  %v1611_v62 = vld [vmem:[%s3369_s1 + $0x6] sm:$0xf]  ;;  %v1644_v24 = vld [vmem:[%s3373_s5 + $0x18] sm:$0xff]  ;;  %v1647_v58 = vld [vmem:[%s3373_s5 + $0x30] sm:$0xff] }
 0x357   :  { %v1315_v32 = vrot.slane %v1307_v43, 6  ;;  %v1317_v1 = vrot.slane %v1309_v59, 6  ;;  %v1314_v51 = vrot.slane %v1306_v54, 6  ;;  %v1316_v11 = vrot.slane %v1308_v42, 6  ;;  %v1642_v33 = vld [vmem:[%s3373_s5 + $0x8] sm:$0xff]  ;;  %v1645_v19 = vld [vmem:[%s3373_s5 + $0x20] sm:$0xff] }
 0x358   :  { %v1646_v50 = vld [vmem:[%s3373_s5 + $0x28] sm:$0xff] }
 0x359   :  { %v1324_v9 = vsel %vm1322_vm12, %v2632_v46, %v1315_v32  ;;  %v1326_v35 = vsel %vm1322_vm12, %v3422_v44, %v1317_v1  ;;  %v1323_v49 = vsel %vm1322_vm12, %v3423_v13, %v1314_v51  ;;  %v1325_v48 = vsel %vm1322_vm12, %v3424_v63, %v1316_v11  ;;  %v1643_v11 = vld [vmem:[%s3373_s5 + $0x10] sm:$0xff] }
 0x35a   :  { %1455 = vmatprep.mubr.f32.mxu0 %v1324_v9  ;;  %1525 = vmatprep.mubr.f32.mxu1 %v1326_v35  ;;  %v1648_v9 = vld [vmem:[%s3373_s5 + $0x38] sm:$0xff] }
 0x35b   :  { %1456 = vmatmul.mubr.f32.vlgmr.msra.gmra.mrb[0].mxu0 %v1323_v49  ;;  %1526 = vmatmul.mubr.f32.vlgmr.msra.gmra.mrb[0].mxu1 %v1325_v48 }
 0x42e   :  { %v2080_v6 = vpop.f32.mrb[0].mxu0  ;;  %v2115_v30 = vpop.f32.mrb[0].mxu1 }
 0x42f   :  { %v2081_v52 = vpop.f32.mrb[1].mxu0  ;;  %v2116_v46 = vpop.f32.mrb[1].mxu1 }
 0x430   :  { %v2082_v23 = vadd.f32 %v2081_v52, %v2080_v6  ;;  %v2117_v53 = vadd.f32 %v2116_v46, %v2115_v30  ;;  %v1649_v52 = vld [vmem:[%s3373_s5 + $0x40] sm:$0xff] }
 0x431   :  { %v1867_v46 = vld [vmem:[%s3374_s6] sm:$0x1f] }
 0x432   :  { %v3200_v17 = vadd.f32 %v2117_v53, %v2082_v23 }
 0x434   :  { %v1532_v45 = vrot.slane %v3200_v17, 1  ;;  %v1596_v34 = vrot.slane %v3200_v17, %v2493_v3 }
 0x436   :  { %v1534_v40 = vsel %vm74_vm0, %v3200_v17, %v1532_v45 }
 0x437   :  { %v1544_v15 = vrot.slane %v1534_v40, %v2490_v2  ;;  %v1554_v26 = vrot.slane %v1534_v40, %v2493_v3  ;;  %v1564_v27 = vrot.slane %v1534_v40, %v2496_v4  ;;  %v1574_v20 = vrot.slane %v1534_v40, %v2499_v5  ;;  %v1591_v2 = vpop.permute.xlu1 %1590  ;;  %v1641_v3 = vld [vmem:[%s3373_s5] sm:$0xff] }
 0x438   :  { %v1584_v60 = vrot.slane %v1534_v40, %v1583_v0  ;;  %v1597_v4 = vmul.f32 %v1596_v34, %v1591_v2  ;;  %v2041_v0 = vld [vmem:[%s3377_s9 + $0x1] ss:$0 sm:$0xff]  ;;  %v2043_v34 = vld [vmem:[%s3377_s9 + $0x3] ss:$0 sm:$0xff] }
 0x439   :  { %v1545_v14 = vmul.f32 %v1544_v15, %v1539_v56  ;;  %v1555_v25 = vmul.f32 %v1554_v26, %v1549_v21  ;;  %v1565_v12 = vmul.f32 %v1564_v27, %v1559_v7  ;;  %v1575_v41 = vmul.f32 %v1574_v20, %v1569_v55 }
 0x43a   :  { %v1585_v31 = vmul.f32 %v1584_v60, %v1579_v8  ;;  %v1635_v7 = vrot.slane %v3200_v17, 2 }
 0x43b   :  { %v1556_v28 = vadd.f32 %v1555_v25, %v1545_v14 }
 0x43d   :  { %v1566_v57 = vadd.f32 %v1565_v12, %v1556_v28  ;;  %v2042_v28 = vld [vmem:[%s3377_s9 + $0x2] ss:$0 sm:$0xff] }
 0x43f   :  { %v1576_v16 = vadd.f32 %v1575_v41, %v1566_v57 }
 0x441   :  { %v1586_v10 = vadd.f32 %v1585_v31, %v1576_v16 }
 0x443   :  { %v1599_v29 = vadd.f32 %v1597_v4, %v1586_v10 }
 0x445   :  { %v1600_v36 = vsel %vm1241_vm11, %v1599_v29, 0.0  ;;  %v1604_v22 = vmul.f32 %v1599_v29, %v1599_v29 }
 0x446   :  { %1601 = vadd.xlane.f32.xlu0 %v1600_v36 }
 0x447   :  { %v1605_v5 = vsel %vm1241_vm11, %v1604_v22, 0.0 }
 0x448   :  { %1606 = vadd.xlane.f32.xlu1 %v1605_v5 }
 0x459   :  { %1624 = vperm.xlu1 %2327, %v1611_v62  }
 0x45d   :  { %2329 = vset.pattern.permute.xlu1 %v3418_v61 }
 0x45e   :  { %1660 = vperm.xlu1 %2329, %v1641_v3  }
 0x462   :  { %1681 = vperm.xlu1 %2329, %v1642_v33  }
 0x466   :  { %1723 = vperm.xlu1 %2329, %v1644_v24  }
 0x46a   :  { %1736 = vperm.xlu1 %2329, %v1645_v19  }
 0x46e   :  { %1757 = vperm.xlu1 %2329, %v1646_v50  }
 0x472   :  { %1778 = vperm.xlu1 %2329, %v1647_v58  }
 0x4d3   :  { %v1602_v37 = vpop.xlane.xlu0 %1601 }
 0x4d4   :  { %v1603_v38 = vmul.f32 0.0078125, %v1602_v37 }
 0x4d5   :  { %v1607_v43 = vpop.xlane.xlu1 %1606 }
 0x4d6   :  { %v1609_v59 = vmul.f32 %v1603_v38, %v1603_v38  ;;  %v1608_v54 = vmul.f32 0.0078125, %v1607_v43  ;;  %v1612_v44 = vsub.f32 %v1599_v29, %v1603_v38  ;;  %v2044_v38 = vld [vmem:[%s3377_s9 + $0x5] ss:$0 sm:$0xff] }
 0x4d8   :  { %v1610_v42 = vsub.f32 %v1608_v54, %v1609_v59 }
 0x4d9   :  { %v1625_v49 = vpop.permute.xlu1 %1624 }
 0x4da   :  { %v1613_v32 = vadd.f32 1e-05, %v1610_v42 }
 0x4dc   :  { %2341 = vrsqrt.f32 %v1613_v32 }
 0x4dd   :  { %v1661_v23 = vpop.permute.xlu1 %1660 }
 0x4e1   :  { %v1682_v53 = vpop.permute.xlu1 %1681 }
 0x4e5   :  { %v1724_v55 = vpop.permute.xlu1 %1723 }
 0x4e6   :  { %v2342_v1 = vpop.eup %2341 }
 0x4e7   :  { %v1615_v51 = vmul.f32 %v2342_v1, %v1611_v62 }
 0x4e9   :  { %1618 = vperm.xlu0 %2318, %v1615_v51   ;;  %v1737_v40 = vpop.permute.xlu1 %1736 }
 0x4ed   :  { %2328 = vset.pattern.permute.xlu0 %v3417_v18  ;;  %v1758_v15 = vpop.permute.xlu1 %1757 }
 0x4ee   :  { %1630 = vperm.xlu0 %2328, %v1611_v62  }
 0x4f1   :  { %v3261_v27 = vpop.permute.xlu1 %1778 }
 0x4f2   :  { %2330 = vset.pattern.permute.xlu0 %v3418_v61 }
 0x4f3   :  { %1702 = vperm.xlu0 %2330, %v1643_v11  }
 0x4f7   :  { %1799 = vperm.xlu0 %2330, %v1648_v9   ;;  %v2046_v9 = vld [vmem:[%s3377_s9 + $0x7] ss:$0 sm:$0xff] }
 0x568   :  { %v1619_v35 = vpop.permute.xlu0 %1618 }
 0x569   :  { %v1621_v13 = vmul.f32 %v1619_v35, %v1612_v44 }
 0x56b   :  { %v1627_v63 = vadd.f32 %v1625_v49, %v1621_v13 }
 0x56d   :  { %v1631_v48 = vpop.permute.xlu0 %1630  ;;  %vm1628_vm2 = vcmp.gt.f32.partialorder %v1627_v63, 0.0 }
 0x56e   :  { %v1633_v56 = vmul.f32 %v1631_v48, %v1627_v63 }
 0x570   :  { %v3246_v21 = vsel %vm1628_vm2, %v1627_v63, %v1633_v56 }
 0x571   :  { %v1638_v6 = vrot.slane %v3246_v21, 4  ;;  %v1864_v32 = vrot.slane %v3246_v21, 7 }
 0x572   :  { %v1703_v26 = vpop.permute.xlu0 %1702 }
 0x573   :  { %v1640_v30 = vsel %vm1241_vm11, %v1635_v7, %v1638_v6  ;;  %v1866_v48 = vsel %vm74_vm0, %v1532_v45, %v1864_v32 }
 0x574   :  { %1671 = vrot.lane.b32.xlu0 %v1640_v30, %s2377_s28  ;;  %1650 = vrot.lane.b32.xlu1 %v1640_v30, %s2405_s25  ;;  %s2407_s28 = smov 120   ;;  %v1739_v3 = vmul.f32 %v1737_v40, %v1640_v30 }
 0x576   :  { %v1800_v47 = vpop.permute.xlu0 %1799  ;;  %v1740_v37 = vrot.slane %v1739_v3, 4 }
 0x578   :  { %1692 = vrot.lane.b32.xlu0 %v1640_v30, %s2406_s29  ;;  %1820 = vperm.xlu1 %2329, %v1649_v52   ;;  %v1741_v11 = vadd.f32 %v1740_v37, %v1739_v3 }
 0x57a   :  { %v1742_v52 = vrot.slane %v1741_v11, 2 }
 0x57c   :  { %1713 = vrot.lane.b32.xlu0 %v1640_v30, %s2400_s22  ;;  %1747 = vrot.lane.b32.xlu1 %v1640_v30, %s2401_s23 }
 0x57d   :  { %2331 = vset.pattern.permute.xlu1 %v3419_v39  ;;  %v2040_v39 = vld [vmem:[%s3377_s9] ss:$0 sm:$0xff] }
 0x580   :  { %1870 = vperm.xlu0 %2330, %v1867_v46   ;;  %1789 = vrot.lane.b32.xlu1 %v1640_v30, %s2407_s28  ;;  %v2045_v46 = vld [vmem:[%s3377_s9 + $0x6] ss:$0 sm:$0xff] }
 0x584   :  { %1768 = vrot.lane.b32.xlu0 %v1640_v30, %s2408_s30 }
 0x588   :  { %1810 = vrot.lane.b32.xlu0 %v1640_v30, %s2409_s7 }
 0x5e6   :  { %v1651_v8 = vpop.permute.xlu1 %1650  ;;  %v1672_v14 = vpop.permute.xlu0 %1671 }
 0x5e7   :  { %v1657_v25 = vmul.f32 %v2040_v39, %v1651_v8  ;;  %v1678_v20 = vmul.f32 %v2041_v0, %v1672_v14 }
 0x5e9   :  { %v1663_v60 = vmul.f32 %v1661_v23, %v1657_v25  ;;  %v1684_v57 = vmul.f32 %v1682_v53, %v1678_v20  ;;  %v1743_v25 = vadd.f32 %v1742_v52, %v1741_v11  ;;  %v1921_v52 = vld [vmem:[%s3378_s10 + $0x8] sm:$0xff] }
 0x5ea   :  { %v1693_v12 = vpop.permute.xlu0 %1692 }
 0x5eb   :  { %v1699_v41 = vmul.f32 %v2042_v28, %v1693_v12  ;;  %v1664_v31 = vrot.slane %v1663_v60, 4  ;;  %v1685_v10 = vrot.slane %v1684_v57, 4  ;;  %v2047_v28 = vld [vmem:[%s3377_s9 + $0x8] ss:$0 sm:$0xff] }
 0x5ed   :  { %v1705_v2 = vmul.f32 %v1703_v26, %v1699_v41  ;;  %v1665_v22 = vadd.f32 %v1664_v31, %v1663_v60  ;;  %v1686_v5 = vadd.f32 %v1685_v10, %v1684_v57 }
 0x5ee   :  { %v1714_v16 = vpop.permute.xlu0 %1713 }
 0x5ef   :  { %v1720_v4 = vmul.f32 %v2043_v34, %v1714_v16  ;;  %v1706_v36 = vrot.slane %v1705_v2, 4  ;;  %v1666_v24 = vrot.slane %v1665_v22, 2  ;;  %v1687_v19 = vrot.slane %v1686_v5, 2 }
 0x5f1   :  { %v1726_v29 = vmul.f32 %v1724_v55, %v1720_v4  ;;  %v1707_v33 = vadd.f32 %v1706_v36, %v1705_v2  ;;  %v1667_v59 = vadd.f32 %v1666_v24, %v1665_v22  ;;  %v1688_v54 = vadd.f32 %v1687_v19, %v1686_v5 }
 0x5f3   :  { %v1727_v62 = vrot.slane %v1726_v29, 4  ;;  %v1708_v43 = vrot.slane %v1707_v33, 2  ;;  %v1668_v13 = vrot.slane %v1667_v59, 1  ;;  %v1689_v49 = vrot.slane %v1688_v54, 1 }
 0x5f5   :  { %v1728_v58 = vadd.f32 %v1727_v62, %v1726_v29  ;;  %v1709_v44 = vadd.f32 %v1708_v43, %v1707_v33  ;;  %v1690_v26 = vadd.f32 %v1689_v49, %v1688_v54  ;;  %v1744_v29 = vrot.slane %v1743_v25, 1 }
 0x5f7   :  { %v1821_v50 = vpop.permute.xlu1 %1820  ;;  %v1729_v1 = vrot.slane %v1728_v58, 2  ;;  %v1710_v23 = vrot.slane %v1709_v44, 1 }
 0x5f9   :  { %v1730_v7 = vadd.f32 %v1729_v1, %v1728_v58  ;;  %v1711_v12 = vadd.f32 %v1710_v23, %v1709_v44  ;;  %v2410_v23 = vmov 0.0|0.0  }
 0x5fa   :  { %2234 = vmatprep.subr.bf16.mxu0 %v2410_v23 }
 0x5fb   :  { %v1748_v42 = vpop.permute.xlu1 %1747  ;;  %v1731_v45 = vrot.slane %v1730_v7, 1 }
 0x5fc   :  { %v1754_v51 = vmul.f32 %v2044_v38, %v1748_v42 }
 0x5fd   :  { %v1732_v16 = vadd.f32 %v1731_v45, %v1730_v7 }
 0x5fe   :  { %v1760_v35 = vmul.f32 %v1758_v15, %v1754_v51  ;;  %v1669_v15 = vadd.f32 %v1668_v13, %v1667_v59 }
 0x5ff   :  { %v1790_v63 = vpop.permute.xlu1 %1789  ;;  %v1871_v56 = vpop.permute.xlu0 %1870 }
 0x600   :  { %v1761_v21 = vrot.slane %v1760_v35, 4  ;;  %v1796_v6 = vmul.f32 %v2046_v9, %v1790_v63  ;;  %v1873_v30 = vmul.f32 %v1871_v56, %v1866_v48  ;;  %v1691_v41 = vadd.f32 %v1690_v26, %v1669_v15  ;;  %v1925_v15 = vld [vmem:[%s3378_s10 + $0x28] sm:$0xff] }
 0x602   :  { %v1762_v53 = vadd.f32 %v1761_v21, %v1760_v35  ;;  %v1802_v55 = vmul.f32 %v1800_v47, %v1796_v6  ;;  %v1875_v40 = vsel %vm1874_vm3, %v1873_v30, 0.0  ;;  %v1712_v22 = vadd.f32 %v1711_v12, %v1691_v41  ;;  %v1892_v21 = vld [vmem:[%s3369_s1 + $0xb] sm:$0x1]  ;;  %v1840_v6 = vld [vmem:[%s3369_s1 + $0xa] sm:$0x1]  ;;  %v1920_v30 = vld [vmem:[%s3378_s10] sm:$0xff] }
 0x603   :  { %v1876_v17 = vrot.slane %v1875_v40, 4  ;;  %v1769_v39 = vpop.permute.xlu0 %1768 }
 0x604   :  { %v1763_v0 = vrot.slane %v1762_v53, 2  ;;  %v1803_v8 = vrot.slane %v1802_v55, 4  ;;  %v1775_v14 = vmul.f32 %v2045_v46, %v1769_v39  ;;  %v1733_v24 = vadd.f32 %v1732_v16, %v1712_v22  ;;  %v1922_v46 = vld [vmem:[%s3378_s10 + $0x10] sm:$0xff] }
 0x605   :  { %v1877_v20 = vadd.f32 %v1876_v17, %v1875_v40  ;;  %v1924_v40 = vld [vmem:[%s3378_s10 + $0x20] sm:$0xff]  ;;  %v1926_v16 = vld [vmem:[%s3378_s10 + $0x30] sm:$0xff] }
 0x606   :  { %v1764_v60 = vadd.f32 %v1763_v0, %v1762_v53  ;;  %v1804_v57 = vadd.f32 %v1803_v8, %v1802_v55  ;;  %v1781_v47 = vmul.f32 %v3261_v27, %v1775_v14  ;;  %v1745_v27 = vadd.f32 %v1744_v29, %v1743_v25  ;;  %v1923_v55 = vld [vmem:[%s3378_s10 + $0x18] sm:$0xff]  ;;  %v1929_v29 = vld [vmem:[%s3378_s10 + $0x48] sm:$0xff] }
 0x607   :  { %v1878_v34 = vrot.slane %v1877_v20, 2  ;;  %v1811_v2 = vpop.permute.xlu0 %1810  ;;  %v2235_v53 = vpack.c.bf16 %v1921_v52, %v1920_v30  ;;  %v2241_v26 = vpack.c.bf16 %v1925_v15, %v1924_v40 }
 0x608   :  { %v1805_v31 = vrot.slane %v1804_v57, 2  ;;  %v1782_v10 = vrot.slane %v1781_v47, 4  ;;  %v1817_v4 = vmul.f32 %v2047_v28, %v1811_v2  ;;  %v1765_v5 = vrot.slane %v1764_v60, 1 }
 0x609   :  { %v1879_v36 = vadd.f32 %v1878_v34, %v1877_v20  ;;  %2236 = vmatpush3.bf16.msra.mxu0 %v2235_v53 }
 0x60a   :  { %v1783_v62 = vadd.f32 %v1782_v10, %v1781_v47  ;;  %v1823_v3 = vmul.f32 %v1821_v50, %v1817_v4  ;;  %v1806_v19 = vadd.f32 %v1805_v31, %v1804_v57  ;;  %v1766_v43 = vadd.f32 %v1765_v5, %v1764_v60  ;;  %2237 = vmatprep.subr.bf16.mxu0 %v2410_v23  ;;  %v1927_v31 = vld [vmem:[%s3378_s10 + $0x38] sm:$0xff]  ;;  %v1928_v4 = vld [vmem:[%s3378_s10 + $0x40] sm:$0xff] }
 0x60b   :  { %v1880_v33 = vrot.slane %v1879_v36, 1  ;;  %v1746_v50 = vadd.f32 %v1745_v27, %v1733_v24  ;;  %v2244_v10 = vpack.c.bf16 %v1927_v31, %v1926_v16  ;;  %v2247_v22 = vpack.c.bf16 %v1929_v29, %v1928_v4  ;;  %v1931_v5 = vld [vmem:[%s3378_s10 + $0x58] sm:$0xff]  ;;  %v1932_v24 = vld [vmem:[%s3378_s10 + $0x60] sm:$0xff] }
 0x60c   :  { %v1784_v58 = vrot.slane %v1783_v62, 2  ;;  %v1824_v37 = vrot.slane %v1823_v3, 4  ;;  %v1807_v32 = vrot.slane %v1806_v19, 1  ;;  %v1935_v27 = vld [vmem:[%s3378_s10 + $0x78] sm:$0xff] }
 0x60d   :  { %v3292_v38 = vadd.f32 %v1880_v33, %v1879_v36  ;;  %v1767_v44 = vadd.f32 %v1766_v43, %v1746_v50  ;;  %v1930_v36 = vld [vmem:[%s3378_s10 + $0x50] sm:$0xff]  ;;  %v2412_v43 = vmov 0.0  }
 0x60e   :  { %v1785_v59 = vadd.f32 %v1784_v58, %v1783_v62  ;;  %v1825_v54 = vadd.f32 %v1824_v37, %v1823_v3  ;;  %v1808_v13 = vadd.f32 %v1807_v32, %v1806_v19  ;;  %v2250_v33 = vpack.c.bf16 %v1931_v5, %v1930_v36  ;;  %v1933_v19 = vld [vmem:[%s3378_s10 + $0x68] sm:$0xff]  ;;  %v1934_v37 = vld [vmem:[%s3378_s10 + $0x70] sm:$0xff]  ;;  %2167 = vmatprep.mubr.msk.f32.mxu0 %vm2411_vm4, %v2412_v43 }
 0x60f   :  { %1883 = vadd.xlane.f32.xlu1 %v3292_v38  ;;  %v1886_v42 = vmul.f32 %v3292_v38, %v3292_v38  ;;  %v2253_v58 = vpack.c.bf16 %v1933_v19, %v1932_v24 }
 0x610   :  { %v1786_v1 = vrot.slane %v1785_v59, 1  ;;  %v1826_v51 = vrot.slane %v1825_v54, 2 }
 0x611   :  { %1887 = vadd.xlane.f32.xlu0 %v1886_v42 }
 0x612   :  { %v1787_v11 = vadd.f32 %v1786_v1, %v1785_v59  ;;  %v1827_v9 = vadd.f32 %v1826_v51, %v1825_v54 }
 0x614   :  { %v1788_v35 = vadd.f32 %v1787_v11, %v1767_v44  ;;  %v1828_v49 = vrot.slane %v1827_v9, 1 }
 0x616   :  { %v1809_v63 = vadd.f32 %v1808_v13, %v1788_v35  ;;  %v1829_v48 = vadd.f32 %v1828_v49, %v1827_v9 }
 0x618   :  { %v3297_v56 = vadd.f32 %v1829_v48, %v1809_v63 }
 0x61a   :  { %1831 = vadd.xlane.f32.xlu0 %v3297_v56  ;;  %v1834_v7 = vmul.f32 %v3297_v56, %v3297_v56 }
 0x61e   :  { %1835 = vadd.xlane.f32.xlu0 %v1834_v7 }
 0x620   :  { %1905 = vperm.xlu1 %2331, %v1892_v21  }
 0x624   :  { %1853 = vperm.xlu1 %2331, %v1840_v6  }
 0x628   :  { %2332 = vset.pattern.permute.xlu1 %v3418_v61  ;;  %v2238_v61 = vpack.c.bf16 %v1923_v55, %v1922_v46 }
 0x62a   :  { %2239 = vmatpush3.bf16.msra.mxu0 %v2238_v61 }
 0x62b   :  { %2240 = vmatprep.subr.bf16.mxu0 %v2410_v23 }
 0x62e   :  { %2242 = vmatpush3.bf16.msra.mxu0 %v2241_v26 }
 0x62f   :  { %2243 = vmatprep.subr.bf16.mxu0 %v2410_v23 }
 0x632   :  { %2245 = vmatpush3.bf16.msra.mxu0 %v2244_v10 }
 0x633   :  { %2246 = vmatprep.subr.bf16.mxu0 %v2410_v23 }
 0x636   :  { %2248 = vmatpush3.bf16.msra.mxu0 %v2247_v22 }
 0x637   :  { %2249 = vmatprep.subr.bf16.mxu0 %v2410_v23 }
 0x63a   :  { %2251 = vmatpush3.bf16.msra.mxu0 %v2250_v33 }
 0x63b   :  { %2252 = vmatprep.subr.bf16.mxu0 %v2410_v23 }
 0x63e   :  { %2254 = vmatpush3.bf16.msra.mxu0 %v2253_v58 }
 0x63f   :  { %2255 = vmatprep.subr.bf16.mxu0 %v2410_v23 }
 0x69c   :  { %v1884_v17 = vpop.xlane.xlu1 %1883 }
 0x69d   :  { %v1885_v39 = vmul.f32 0.0078125, %v1884_v17 }
 0x69e   :  { %v1888_v45 = vpop.xlane.xlu0 %1887 }
 0x69f   :  { %v1890_v0 = vmul.f32 %v1885_v39, %v1885_v39  ;;  %v1889_v8 = vmul.f32 0.0078125, %v1888_v45  ;;  %v1893_v32 = vsub.f32 %v3292_v38, %v1885_v39 }
 0x6a0   :  { %v1906_v59 = vpop.permute.xlu1 %1905 }
 0x6a1   :  { %v1891_v14 = vsub.f32 %v1889_v8, %v1890_v0 }
 0x6a3   :  { %v1894_v25 = vadd.f32 1e-05, %v1891_v14 }
 0x6a4   :  { %v1854_v54 = vpop.permute.xlu1 %1853 }
 0x6a5   :  { %2343 = vrsqrt.f32 %v1894_v25 }
 0x6a7   :  { %v1832_v20 = vpop.xlane.xlu0 %1831 }
 0x6a8   :  { %v1833_v28 = vmul.f32 0.0078125, %v1832_v20 }
 0x6aa   :  { %v1838_v60 = vmul.f32 %v1833_v28, %v1833_v28  ;;  %v1841_v11 = vsub.f32 %v3297_v56, %v1833_v28 }
 0x6ab   :  { %v1836_v12 = vpop.xlane.xlu0 %1835 }
 0x6ac   :  { %v1837_v57 = vmul.f32 0.0078125, %v1836_v12 }
 0x6ae   :  { %v1839_v47 = vsub.f32 %v1837_v57, %v1838_v60 }
 0x6af   :  { %v2344_v41 = vpop.eup %2343 }
 0x6b0   :  { %v1896_v34 = vmul.f32 %v2344_v41, %v1892_v21  ;;  %v1842_v2 = vadd.f32 1e-05, %v1839_v47 }
 0x6b2   :  { %2345 = vrsqrt.f32 %v1842_v2  ;;  %1899 = vperm.xlu1 %2332, %v1896_v34  }
 0x6b6   :  { %2333 = vset.pattern.permute.xlu1 %v3417_v18 }
 0x6b7   :  { %1911 = vperm.xlu1 %2333, %v1892_v21  }
 0x6bc   :  { %v2346_v62 = vpop.eup %2345 }
 0x6bd   :  { %v1844_v3 = vmul.f32 %v2346_v62, %v1840_v6 }
 0x6bf   :  { %1847 = vperm.xlu0 %2330, %v1844_v3  }
 0x6c3   :  { %2334 = vset.pattern.permute.xlu0 %v3417_v18  ;;  %v2256_v18 = vpack.c.bf16 %v1935_v27, %v1934_v37 }
 0x6c4   :  { %1859 = vperm.xlu0 %2334, %v1840_v6  }
 0x6c5   :  { %2257 = vmatpush3.bf16.msra.mxu0 %v2256_v18 }
 0x731   :  { %v1900_v42 = vpop.permute.xlu1 %1899 }
 0x732   :  { %v1902_v1 = vmul.f32 %v1900_v42, %v1893_v32 }
 0x734   :  { %v1908_v51 = vadd.f32 %v1906_v59, %v1902_v1 }
 0x736   :  { %v1912_v50 = vpop.permute.xlu1 %1911  ;;  %vm1909_vm5 = vcmp.gt.f32.partialorder %v1908_v51, 0.0 }
 0x737   :  { %v1914_v9 = vmul.f32 %v1912_v50, %v1908_v51 }
 0x739   :  { %v1915_v49 = vsel %vm1909_vm5, %v1908_v51, %v1914_v9 }
 0x73a   :  { %v1917_v7 = vrot.slane %v1915_v49, 7 }
 0x73e   :  { %v1848_v44 = vpop.permute.xlu0 %1847 }
 0x73f   :  { %v1850_v35 = vmul.f32 %v1848_v44, %v1841_v11 }
 0x741   :  { %v1856_v13 = vadd.f32 %v1854_v54, %v1850_v35 }
 0x743   :  { %v1860_v63 = vpop.permute.xlu0 %1859  ;;  %vm1857_vm6 = vcmp.gt.f32.partialorder %v1856_v13, 0.0 }
 0x744   :  { %v1862_v48 = vmul.f32 %v1860_v63, %v1856_v13 }
 0x746   :  { %v1863_v21 = vsel %vm1857_vm6, %v1856_v13, %v1862_v48 }
 0x747   :  { %v1919_v6 = vsel %vm74_vm0, %v1863_v21, %v1917_v7 }
 0x748   :  { %2168 = vmatmul.mubr.f32.vlgmr.msra.gmra.mrb[2].mxu0 %v1919_v6 }
 0x81b   :  { %v2002_v38 = vpop.f32.mrb[2].mxu0 }
 0x81c   :  { %v2007_v30 = vsel %vm2006_vm7, %v2002_v38, -inf  ;;  %v2169_v52 = vpop.f32.mrb[3].mxu0 }
 0x81d   :  { %v2008_v56 = vrot.slane %v2007_v30, 4 }
 0x81f   :  { %v2009_v46 = vmax.f32 %v2007_v30, %v2008_v56 }
 0x821   :  { %v2010_v23 = vrot.slane %v2009_v46, 2 }
 0x823   :  { %v2011_v53 = vmax.f32 %v2009_v46, %v2010_v23 }
 0x825   :  { %v2012_v55 = vrot.slane %v2011_v53, 1 }
 0x827   :  { %v2013_v61 = vmax.f32 %v2011_v53, %v2012_v55 }
 0x829   :  { %v2014_v40 = vsub.f32 %v2002_v38, %v2013_v61 }
 0x82b   :  { %v2015_v15 = vmul.f32 1.442695, %v2014_v40 }
 0x82d   :  { %2347 = vpow2.f32 %v2015_v15 }
 0x837   :  { %v2348_v26 = vpop.eup %2347 }
 0x838   :  { %v2017_v17 = vsel %vm2006_vm7, %v2348_v26, 0.0 }
 0x839   :  { %v2018_v39 = vrot.slane %v2017_v17, 4 }
 0x83b   :  { %v2019_v45 = vadd.f32 %v2018_v39, %v2017_v17 }
 0x83d   :  { %v2020_v0 = vrot.slane %v2019_v45, 2 }
 0x83f   :  { %v2021_v8 = vadd.f32 %v2020_v0, %v2019_v45 }
 0x841   :  { %v2022_v14 = vrot.slane %v2021_v8, 1 }
 0x843   :  { %v2023_v25 = vadd.f32 %v2022_v14, %v2021_v8 }
 0x845   :  { %2349 = vrcp.f32 %v2023_v25 }
 0x84f   :  { %v2350_v20 = vpop.eup %2349 }
 0x850   :  { %v2025_v28 = vmul.f32 %v2350_v20, %v2348_v26 }
 0x852   :  { %2026 = vst.msk [vmem:[%s3379_s11] sm:$0x3] %vm2006_vm7, %v2025_v28 }
 0x853   :  { %2031 = vsyncpa [#allocation3], 1 }

</bundles_post_ra>
